<compile_context>
chip_gen: v6e
topology: v6e:2x2x1
jax: 0.10.0
libtpu: 0.0.40
codegen_flags: <defaults>
</compile_context>

<pallas_src>
import math
import functools

import jax
import jax.numpy as jnp
from jax.experimental import pallas as pl
from jax.experimental.pallas import tpu as pltpu


_LAYER_PARAMS = ["wq", "bq", "wk", "bk", "wv", "bv", "wo", "bo",
                 "w1", "b1", "w2", "b2", "gamma", "beta"]


# ----------------------------- kernel helpers --------------------------------

def _layer_norm(x, gamma, beta, eps=1e-5):
    # PyTorch LayerNorm: biased variance, eps inside sqrt. f32 math.
    mean = jnp.mean(x, axis=-1, keepdims=True)
    var = jnp.mean((x - mean) ** 2, axis=-1, keepdims=True)
    return (x - mean) * jax.lax.rsqrt(var + eps) * gamma + beta


# ----------------------------- fused kernel -----------------------------------

def transformer_kernel(x_ref, pe_ref,
                       wq_ref, bq_ref, wk_ref, bk_ref, wv_ref, bv_ref,
                       wo_ref, bo_ref, w1_ref, b1_ref, w2_ref, b2_ref,
                       gamma_ref, beta_ref, wout_ref, bout_ref,
                       out_ref,
                       x_scr, flat_scr,
                       *, h, q, v, masked_train, add_pe):
    """One encoder layer per grid step; activations stay resident in VMEM."""
    n = pl.program_id(1)
    n_layers = pl.num_programs(1)
    tb, T, D = x_scr.shape
    HQ, HV = h * q, h * v
    bf16 = jnp.bfloat16

    # ---- first layer for this batch tile: load embedded tokens (+ PE) --------
    @pl.when(n == 0)
    def _():
        x0 = x_ref[...]                                   # (tb, T, D) f32
        if add_pe:
            x0 = x0 + pe_ref[...]                         # (1, T, D) broadcast
        x_scr[...] = x0

    x2 = x_scr[...].reshape(tb * T, D)                    # (tb*T, D) f32
    xb = x2.astype(bf16)
    gamma = gamma_ref[...]                                # (1, D) f32
    beta = beta_ref[...]                                  # (1, D) f32

    # ---- multi-head attention (whole batch tile as one (tb*T, D) GEMM) -------
    Q = jnp.dot(xb, wq_ref[...], preferred_element_type=jnp.float32) + bq_ref[...]
    K = jnp.dot(xb, wk_ref[...], preferred_element_type=jnp.float32) + bk_ref[...]
    V = jnp.dot(xb, wv_ref[...], preferred_element_type=jnp.float32) + bv_ref[...]

    # Single bf16 cast of the MXU operands (no per-head casts).
    Qb = Q.astype(bf16).reshape(tb, T, HQ)
    Kb = K.astype(bf16).reshape(tb, T, HQ)
    Vb = V.astype(bf16).reshape(tb, T, HV)

    if masked_train:
        # Torch behavior: tril(zeros) > 0 is all-False, so the score tensor is
        # zeroed and softmax(zeros) is uniform -> context is the mean over keys.
        V3 = V.reshape(tb, T, HV)                          # f32
        ctx_all = jnp.broadcast_to(
            jnp.mean(V3, axis=1, keepdims=True), (tb, T, HV))
    else:
        ctx_heads = []
        for i in range(h):                                 # short static unroll
            Qh = Qb[:, :, i * q:(i + 1) * q]               # (tb, T, q) bf16
            Kh = Kb[:, :, i * q:(i + 1) * q]
            Vh = Vb[:, :, i * v:(i + 1) * v]
            # no 1/sqrt(q) scaling -- the PyTorch reference omits it.
            s = jnp.einsum('btq,bsq->bts', Qh, Kh,
                           preferred_element_type=jnp.float32)   # (tb, T, T)
            m = jnp.max(s, axis=-1, keepdims=True)
            e = jnp.exp(s - m)
            p = e / jnp.sum(e, axis=-1, keepdims=True)
            ctx_heads.append(jnp.einsum('bts,bsv->btv', p.astype(bf16), Vh,
                                        preferred_element_type=jnp.float32))
        ctx_all = jnp.concatenate(ctx_heads, axis=-1)      # (tb, T, h*v) f32

    # Single output projection over all heads: contraction depth h*v.
    attn = jnp.dot(ctx_all.reshape(tb * T, HV).astype(bf16), wo_ref[...],
                   preferred_element_type=jnp.float32) + bo_ref[...]

    # dropout == identity (eval mode)
    x1 = _layer_norm(attn + x2, gamma, beta)               # (tb*T, D) f32

    # ---- position-wise feed-forward ------------------------------------------
    hid = jnp.dot(x1.astype(bf16), w1_ref[...],
                  preferred_element_type=jnp.float32) + b1_ref[...]
    hid = jnp.maximum(hid, 0.0)
    ffn = jnp.dot(hid.astype(bf16), w2_ref[...],
                  preferred_element_type=jnp.float32) + b2_ref[...]

    xn = _layer_norm(ffn + x1, gamma, beta)                # (tb*T, D) f32
    x_scr[...] = xn.reshape(tb, T, D)                      # carry to next layer

    # ---- classifier on the last layer: one (tb, T*D) @ (T*D, C) GEMM ---------
    @pl.when(n == n_layers - 1)
    def _():
        xn3 = xn.reshape(tb, T, D)
        for t in range(T):                                 # cheap VMEM lane stores
            flat_scr[:, t * D:(t + 1) * D] = xn3[:, t, :]
        out_ref[...] = (jnp.dot(flat_scr[...].astype(bf16), wout_ref[...],
                                preferred_element_type=jnp.float32)
                        + bout_ref[...])


# ----------------------------- wrapper -----------------------------------------

def transformer_forward(tokens, params, *, h, q, v, stage="eval",
                        mask=True, pe=True, block_b=1):
    # Embedding gather is plain-JAX glue (data-dependent gather).
    x = params["embedding"][tokens]                        # (B, T, D) f32
    B, T, D = x.shape
    C = params["b_out"].shape[-1]
    n_layers = params["wq"].shape[0]
    d_hidden = params["w1"].shape[-1]
    masked_train = bool(mask and stage == "train")

    tb = B if block_b is None else max(1, min(block_b, B))
    if B % tb:
        tb = B                                             # fall back: one tile
    n_bt = B // tb

    kernel = functools.partial(transformer_kernel, h=h, q=q, v=v,
                               masked_train=masked_train, add_pe=bool(pe))

    def _layer_spec(name):
        s = params[name].shape                             # (N, a, b)
        return pl.BlockSpec((None, s[1], s[2]), lambda b, n: (n, 0, 0))

    in_specs = (
        [pl.BlockSpec((tb, T, D), lambda b, n: (b, 0, 0)),     # x (per batch tile)
         pl.BlockSpec((1, T, D), lambda b, n: (0, 0, 0))]      # positional enc.
        + [_layer_spec(k) for k in _LAYER_PARAMS]              # streamed per layer
        + [pl.BlockSpec((T * D, C), lambda b, n: (0, 0)),      # classifier W
           pl.BlockSpec((1, C), lambda b, n: (0, 0))]          # classifier b
    )
    out_spec = pl.BlockSpec((None, tb, C), lambda b, n: (b, 0, 0))

    args = ([x, params["pe"]] + [params[k] for k in _LAYER_PARAMS]
            + [params["w_out"], params["b_out"]])

    # VMEM budget: double-buffered per-layer weights + resident activations.
    per_layer_bytes = sum(int(params[k].size) * params[k].dtype.itemsize
                          for k in _LAYER_PARAMS) // n_layers
    act_bytes = (tb * T * (6 * D + 3 * h * q + 2 * h * v + 2 * d_hidden) * 4
                 + 3 * tb * T * T * 4 + 2 * tb * T * D * 4 + T * D * (2 * C + 4))
    vmem_limit = int(min(max(4 * per_layer_bytes + 2 * act_bytes + (1 << 20),
                             16 << 20), 48 << 20))

    flops = (2 * B * T * n_layers
             * (D * (2 * h * q + h * v) + T * (h * q + h * v)
                + h * v * D + 2 * D * d_hidden)
             + 2 * B * T * D * C)
    bytes_accessed = sum(int(a.size) * a.dtype.itemsize for a in args) + B * C * 4
    cost = pl.CostEstimate(flops=int(flops),
                           transcendentals=int(B * n_layers * h * T * T),
                           bytes_accessed=int(bytes_accessed))

    out = pl.pallas_call(
        kernel,
        out_shape=jax.ShapeDtypeStruct((n_bt, tb, C), jnp.float32),
        grid_spec=pltpu.PrefetchScalarGridSpec(
            num_scalar_prefetch=0,
            grid=(n_bt, n_layers),
            in_specs=in_specs,
            out_specs=out_spec,
            scratch_shapes=[pltpu.VMEM((tb, T, D), jnp.float32),    # x carry
                            pltpu.VMEM((tb, T * D), jnp.float32)],  # flat for W_out
        ),
        compiler_params=pltpu.CompilerParams(
            dimension_semantics=("parallel", "arbitrary"),
            vmem_limit_bytes=vmem_limit),
        cost_estimate=cost,
    )(*args)
    return out.reshape(B, C)


def positional_encoding(T, D):
    pos = jnp.arange(T, dtype=jnp.float32)[:, None]                       # (T, 1)
    temp = jnp.arange(0, D, 2, dtype=jnp.float32) * (-math.log(10000.0) / D)
    temp = jnp.exp(temp)[None, :]                                         # (1, D/2)
    ang = pos @ temp                                                      # (T, D/2)
    pe = jnp.ones((T, D), dtype=jnp.float32)
    pe = pe.at[:, 0::2].set(jnp.sin(ang))
    pe = pe.at[:, 1::2].set(jnp.cos(ang))
    return pe


# ----------------------------- param init --------------------------------------

def _init_linear(key, fan_in, fan_out):
    k1, k2 = jax.random.split(key)
    bound = 1.0 / math.sqrt(fan_in)
    w = jax.random.uniform(k1, (fan_in, fan_out), jnp.float32, -bound, bound)
    b = jax.random.uniform(k2, (1, fan_out), jnp.float32, -bound, bound)
    return w, b


def init_transformer_params(key, *, d_embedding, voc_dict_len, time_step_len,
                            q, v, h, N, d_hidden, number_of_classes):
    keys = jax.random.split(key, 2 + N)
    emb = jax.random.normal(keys[0], (voc_dict_len, d_embedding), jnp.float32)
    emb = emb.at[voc_dict_len - 1].set(0.0)                 # padding_idx row

    per_layer = {name: [] for name in _LAYER_PARAMS}
    for n in range(N):
        ks = jax.random.split(keys[2 + n], 6)
        wq, bq = _init_linear(ks[0], d_embedding, q * h)
        wk, bk = _init_linear(ks[1], d_embedding, q * h)
        wv, bv = _init_linear(ks[2], d_embedding, v * h)
        wo, bo = _init_linear(ks[3], v * h, d_embedding)
        w1, b1 = _init_linear(ks[4], d_embedding, d_hidden)
        w2, b2 = _init_linear(ks[5], d_hidden, d_embedding)
        layer = dict(wq=wq, bq=bq, wk=wk, bk=bk, wv=wv, bv=bv, wo=wo, bo=bo,
                     w1=w1, b1=b1, w2=w2, b2=b2,
                     gamma=jnp.ones((1, d_embedding), jnp.float32),
                     beta=jnp.zeros((1, d_embedding), jnp.float32))
        for name in _LAYER_PARAMS:
            per_layer[name].append(layer[name])

    def stack(name, dtype=None):
        arr = jnp.stack(per_layer[name])                    # (N, ...)
        return arr.astype(dtype) if dtype is not None else arr

    w_out, b_out = _init_linear(keys[1], d_embedding * time_step_len,
                                number_of_classes)

    bf16 = jnp.bfloat16
    return dict(
        embedding=emb,
        pe=positional_encoding(time_step_len, d_embedding)[None],   # (1, T, D)
        # MXU operand weights in bf16; biases / LayerNorm params stay f32.
        wq=stack("wq", bf16), bq=stack("bq"),
        wk=stack("wk", bf16), bk=stack("bk"),
        wv=stack("wv", bf16), bv=stack("bv"),
        wo=stack("wo", bf16), bo=stack("bo"),
        w1=stack("w1", bf16), b1=stack("b1"),
        w2=stack("w2", bf16), b2=stack("b2"),
        gamma=stack("gamma"), beta=stack("beta"),
        w_out=w_out.astype(bf16),                                   # (T*D, C)
        b_out=b_out,                                                # (1, C)
    )


# ----------------------------- main ---------------------------------------------

if __name__ == "__main__":
    # Small, forward-consistent shapes.
    B = 2
    d_embedding = 32
    voc_dict_len = 50
    time_step_len = 8
    q = 8
    v = 8
    h = 4
    N = 2
    d_hidden = 64
    number_of_classes = 5

    key = jax.random.PRNGKey(0)
    k_params, k_tokens = jax.random.split(key)

    params = init_transformer_params(
        k_params,
        d_embedding=d_embedding, voc_dict_len=voc_dict_len,
        time_step_len=time_step_len, q=q, v=v, h=h, N=N,
        d_hidden=d_hidden, number_of_classes=number_of_classes)

    tokens = jax.random.randint(k_tokens, (B, time_step_len), 0, voc_dict_len,
                                dtype=jnp.int32)

    out = transformer_forward(tokens, params, h=h, q=q, v=v,
                              stage="eval", mask=True, pe=True, block_b=1)
    out = jax.block_until_ready(out)

    assert out.shape == (B, number_of_classes), out.shape
    assert out.dtype == jnp.float32
    assert bool(jnp.all(jnp.isfinite(out)))
    print("KERNEL_OK")
</pallas_src>

<mosaic_0001>
module attributes {stable_mosaic.version = 11 : i64} {
  func.func @transformer_kernel(%arg0: i32, %arg1: i32, %arg2: memref<1x8x32xf32, #tpu.memory_space<vmem>>, %arg3: memref<1x8x32xf32, #tpu.memory_space<vmem>>, %arg4: memref<1x32x32xbf16, #tpu.memory_space<vmem>>, %arg5: memref<1x1x32xf32, #tpu.memory_space<vmem>>, %arg6: memref<1x32x32xbf16, #tpu.memory_space<vmem>>, %arg7: memref<1x1x32xf32, #tpu.memory_space<vmem>>, %arg8: memref<1x32x32xbf16, #tpu.memory_space<vmem>>, %arg9: memref<1x1x32xf32, #tpu.memory_space<vmem>>, %arg10: memref<1x32x32xbf16, #tpu.memory_space<vmem>>, %arg11: memref<1x1x32xf32, #tpu.memory_space<vmem>>, %arg12: memref<1x32x64xbf16, #tpu.memory_space<vmem>>, %arg13: memref<1x1x64xf32, #tpu.memory_space<vmem>>, %arg14: memref<1x64x32xbf16, #tpu.memory_space<vmem>>, %arg15: memref<1x1x32xf32, #tpu.memory_space<vmem>>, %arg16: memref<1x1x32xf32, #tpu.memory_space<vmem>>, %arg17: memref<1x1x32xf32, #tpu.memory_space<vmem>>, %arg18: memref<256x5xbf16, #tpu.memory_space<vmem>>, %arg19: memref<1x5xf32, #tpu.memory_space<vmem>>, %arg20: memref<1x1x5xf32, #tpu.memory_space<vmem>>, %arg21: memref<1x8x32xf32, #tpu.memory_space<vmem>>, %arg22: memref<1x256xf32, #tpu.memory_space<vmem>>) attributes {dimension_semantics = [#tpu.dimension_semantics<parallel>, #tpu.dimension_semantics<arbitrary>], iteration_bounds = array<i64: 2, 2>, scalar_prefetch = 0 : i64, scratch_operands = 2 : i64, tpu.core_type = #tpu.core_type<tc>, window_params = [{transform_indices = @transform_0, window_bounds = array<i64: 1, 8, 32>}, {pipeline_mode = #tpu.pipeline_mode<synchronous>, transform_indices = @transform_1, window_bounds = array<i64: 1, 8, 32>}, {transform_indices = @transform_2, window_bounds = array<i64: 1, 32, 32>}, {transform_indices = @transform_3, window_bounds = array<i64: 1, 1, 32>}, {transform_indices = @transform_4, window_bounds = array<i64: 1, 32, 32>}, {transform_indices = @transform_5, window_bounds = array<i64: 1, 1, 32>}, {transform_indices = @transform_6, window_bounds = array<i64: 1, 32, 32>}, {transform_indices = @transform_7, window_bounds = array<i64: 1, 1, 32>}, {transform_indices = @transform_8, window_bounds = array<i64: 1, 32, 32>}, {transform_indices = @transform_9, window_bounds = array<i64: 1, 1, 32>}, {transform_indices = @transform_10, window_bounds = array<i64: 1, 32, 64>}, {transform_indices = @transform_11, window_bounds = array<i64: 1, 1, 64>}, {transform_indices = @transform_12, window_bounds = array<i64: 1, 64, 32>}, {transform_indices = @transform_13, window_bounds = array<i64: 1, 1, 32>}, {transform_indices = @transform_14, window_bounds = array<i64: 1, 1, 32>}, {transform_indices = @transform_15, window_bounds = array<i64: 1, 1, 32>}, {pipeline_mode = #tpu.pipeline_mode<synchronous>, transform_indices = @transform_16, window_bounds = array<i64: 256, 5>}, {pipeline_mode = #tpu.pipeline_mode<synchronous>, transform_indices = @transform_17, window_bounds = array<i64: 1, 5>}, {transform_indices = @transform_18, window_bounds = array<i64: 1, 1, 5>}]} {
    %c0_i32 = arith.constant 0 : i32
    %0 = arith.cmpi eq, %arg1, %c0_i32 : i32
    %1 = arith.extui %0 : i1 to i32
    %c0_i32_0 = arith.constant 0 : i32
    %2 = arith.cmpi ne, %1, %c0_i32_0 : i32
    scf.if %2 {
      %c0_81 = arith.constant 0 : index
      %c0_82 = arith.constant 0 : index
      %c0_83 = arith.constant 0 : index
      %176 = vector.load %arg2[%c0_81, %c0_82, %c0_83] : memref<1x8x32xf32, #tpu.memory_space<vmem>>, vector<1x8x32xf32>
      %c0_84 = arith.constant 0 : index
      %c0_85 = arith.constant 0 : index
      %c0_86 = arith.constant 0 : index
      %177 = vector.load %arg3[%c0_84, %c0_85, %c0_86] : memref<1x8x32xf32, #tpu.memory_space<vmem>>, vector<1x8x32xf32>
      %178 = arith.addf %176, %177 : vector<1x8x32xf32>
      %c0_87 = arith.constant 0 : index
      %c0_88 = arith.constant 0 : index
      %c0_89 = arith.constant 0 : index
      %179 = vector.load %arg21[%c0_87, %c0_88, %c0_89] : memref<1x8x32xf32, #tpu.memory_space<vmem>>, vector<1x8x32xf32>
      tpu.vector_store %arg21[%c0_87, %c0_88, %c0_89], %178 {strides = array<i32>} : memref<1x8x32xf32, #tpu.memory_space<vmem>>, vector<1x8x32xf32>,
    } else {
    }
    %c0 = arith.constant 0 : index
    %c0_1 = arith.constant 0 : index
    %c0_2 = arith.constant 0 : index
    %3 = vector.load %arg21[%c0, %c0_1, %c0_2] : memref<1x8x32xf32, #tpu.memory_space<vmem>>, vector<1x8x32xf32>
    %4 = vector.shape_cast %3 : vector<1x8x32xf32> to vector<8x32xf32>
    %5 = arith.truncf %4 : vector<8x32xf32> to vector<8x32xbf16>
    %c0_3 = arith.constant 0 : index
    %c0_4 = arith.constant 0 : index
    %c0_5 = arith.constant 0 : index
    %6 = vector.load %arg16[%c0_3, %c0_4, %c0_5] : memref<1x1x32xf32, #tpu.memory_space<vmem>>, vector<1x1x32xf32>
    %7 = vector.shape_cast %6 : vector<1x1x32xf32> to vector<1x32xf32>
    %c0_6 = arith.constant 0 : index
    %c0_7 = arith.constant 0 : index
    %c0_8 = arith.constant 0 : index
    %8 = vector.load %arg17[%c0_6, %c0_7, %c0_8] : memref<1x1x32xf32, #tpu.memory_space<vmem>>, vector<1x1x32xf32>
    %9 = vector.shape_cast %8 : vector<1x1x32xf32> to vector<1x32xf32>
    %c0_9 = arith.constant 0 : index
    %c0_10 = arith.constant 0 : index
    %c0_11 = arith.constant 0 : index
    %10 = vector.load %arg4[%c0_9, %c0_10, %c0_11] : memref<1x32x32xbf16, #tpu.memory_space<vmem>>, vector<1x32x32xbf16>
    %11 = vector.shape_cast %10 : vector<1x32x32xbf16> to vector<32x32xbf16>
    %cst = arith.constant dense<0.000000e+00> : vector<8x32xf32>
    %12 = tpu.matmul %5, %11, %cst {dimension_numbers = #tpu.dot_dimension_numbers<[1], [0], [0], [1], [0, 0, 1, 1], [], []>} : vector<8x32xbf16>, vector<32x32xbf16>, vector<8x32xf32> -> vector<8x32xf32>
    %c0_12 = arith.constant 0 : index
    %c0_13 = arith.constant 0 : index
    %c0_14 = arith.constant 0 : index
    %13 = vector.load %arg5[%c0_12, %c0_13, %c0_14] : memref<1x1x32xf32, #tpu.memory_space<vmem>>, vector<1x1x32xf32>
    %14 = vector.shape_cast %13 : vector<1x1x32xf32> to vector<1x32xf32>
    %15 = vector.broadcast %14 : vector<1x32xf32> to vector<8x32xf32>
    %16 = arith.addf %12, %15 : vector<8x32xf32>
    %c0_15 = arith.constant 0 : index
    %c0_16 = arith.constant 0 : index
    %c0_17 = arith.constant 0 : index
    %17 = vector.load %arg6[%c0_15, %c0_16, %c0_17] : memref<1x32x32xbf16, #tpu.memory_space<vmem>>, vector<1x32x32xbf16>
    %18 = vector.shape_cast %17 : vector<1x32x32xbf16> to vector<32x32xbf16>
    %cst_18 = arith.constant dense<0.000000e+00> : vector<8x32xf32>
    %19 = tpu.matmul %5, %18, %cst_18 {dimension_numbers = #tpu.dot_dimension_numbers<[1], [0], [0], [1], [0, 0, 1, 1], [], []>} : vector<8x32xbf16>, vector<32x32xbf16>, vector<8x32xf32> -> vector<8x32xf32>
    %c0_19 = arith.constant 0 : index
    %c0_20 = arith.constant 0 : index
    %c0_21 = arith.constant 0 : index
    %20 = vector.load %arg7[%c0_19, %c0_20, %c0_21] : memref<1x1x32xf32, #tpu.memory_space<vmem>>, vector<1x1x32xf32>
    %21 = vector.shape_cast %20 : vector<1x1x32xf32> to vector<1x32xf32>
    %22 = vector.broadcast %21 : vector<1x32xf32> to vector<8x32xf32>
    %23 = arith.addf %19, %22 : vector<8x32xf32>
    %c0_22 = arith.constant 0 : index
    %c0_23 = arith.constant 0 : index
    %c0_24 = arith.constant 0 : index
    %24 = vector.load %arg8[%c0_22, %c0_23, %c0_24] : memref<1x32x32xbf16, #tpu.memory_space<vmem>>, vector<1x32x32xbf16>
    %25 = vector.shape_cast %24 : vector<1x32x32xbf16> to vector<32x32xbf16>
    %cst_25 = arith.constant dense<0.000000e+00> : vector<8x32xf32>
    %26 = tpu.matmul %5, %25, %cst_25 {dimension_numbers = #tpu.dot_dimension_numbers<[1], [0], [0], [1], [0, 0, 1, 1], [], []>} : vector<8x32xbf16>, vector<32x32xbf16>, vector<8x32xf32> -> vector<8x32xf32>
    %c0_26 = arith.constant 0 : index
    %c0_27 = arith.constant 0 : index
    %c0_28 = arith.constant 0 : index
    %27 = vector.load %arg9[%c0_26, %c0_27, %c0_28] : memref<1x1x32xf32, #tpu.memory_space<vmem>>, vector<1x1x32xf32>
    %28 = vector.shape_cast %27 : vector<1x1x32xf32> to vector<1x32xf32>
    %29 = vector.broadcast %28 : vector<1x32xf32> to vector<8x32xf32>
    %30 = arith.addf %26, %29 : vector<8x32xf32>
    %31 = arith.truncf %16 : vector<8x32xf32> to vector<8x32xbf16>
    %32 = vector.shape_cast %31 : vector<8x32xbf16> to vector<1x8x32xbf16>
    %33 = arith.truncf %23 : vector<8x32xf32> to vector<8x32xbf16>
    %34 = vector.shape_cast %33 : vector<8x32xbf16> to vector<1x8x32xbf16>
    %35 = arith.truncf %30 : vector<8x32xf32> to vector<8x32xbf16>
    %36 = vector.shape_cast %35 : vector<8x32xbf16> to vector<1x8x32xbf16>
    %37 = vector.extract_strided_slice %32 {offsets = [0, 0, 0], sizes = [1, 8, 8], strides = [1, 1, 1]} : vector<1x8x32xbf16> to vector<1x8x8xbf16>
    %38 = vector.extract_strided_slice %34 {offsets = [0, 0, 0], sizes = [1, 8, 8], strides = [1, 1, 1]} : vector<1x8x32xbf16> to vector<1x8x8xbf16>
    %39 = vector.extract_strided_slice %36 {offsets = [0, 0, 0], sizes = [1, 8, 8], strides = [1, 1, 1]} : vector<1x8x32xbf16> to vector<1x8x8xbf16>
    "tpu.trace_start"() <{level = 10 : i32, message = "btq,bsq->bts"}> : () -> ()
    %cst_29 = arith.constant dense<0.000000e+00> : vector<1x8x8xf32>
    %40 = tpu.matmul %37, %38, %cst_29 {dimension_numbers = #tpu.dot_dimension_numbers<[2], [2], [1], [1], [0, 0, 0, 1, 1, 1], [0], [0]>} : vector<1x8x8xbf16>, vector<1x8x8xbf16>, vector<1x8x8xf32> -> vector<1x8x8xf32>
    "tpu.trace_stop"() : () -> ()
    %cst_30 = arith.constant dense<0xFF800000> : vector<1x8xf32>
    %41 = vector.multi_reduction <maximumf>, %40, %cst_30 [2] : vector<1x8x8xf32> to vector<1x8xf32>
    %42 = vector.shape_cast %41 : vector<1x8xf32> to vector<1x8x1xf32>
    %43 = vector.broadcast %42 : vector<1x8x1xf32> to vector<1x8x8xf32>
    %44 = arith.subf %40, %43 : vector<1x8x8xf32>
    %45 = math.exp %44 : vector<1x8x8xf32>
    %cst_31 = arith.constant dense<0.000000e+00> : vector<1x8xf32>
    %46 = vector.multi_reduction <add>, %45, %cst_31 [2] : vector<1x8x8xf32> to vector<1x8xf32>
    %47 = vector.shape_cast %46 : vector<1x8xf32> to vector<1x8x1xf32>
    %48 = vector.broadcast %47 : vector<1x8x1xf32> to vector<1x8x8xf32>
    %49 = arith.divf %45, %48 : vector<1x8x8xf32>
    %50 = arith.truncf %49 : vector<1x8x8xf32> to vector<1x8x8xbf16>
    "tpu.trace_start"() <{level = 10 : i32, message = "bts,bsv->btv"}> : () -> ()
    %cst_32 = arith.constant dense<0.000000e+00> : vector<1x8x8xf32>
    %51 = tpu.matmul %50, %39, %cst_32 {dimension_numbers = #tpu.dot_dimension_numbers<[2], [1], [1], [2], [0, 0, 0, 1, 1, 2], [0], [0]>} : vector<1x8x8xbf16>, vector<1x8x8xbf16>, vector<1x8x8xf32> -> vector<1x8x8xf32>
    "tpu.trace_stop"() : () -> ()
    %52 = vector.extract_strided_slice %32 {offsets = [0, 0, 8], sizes = [1, 8, 8], strides = [1, 1, 1]} : vector<1x8x32xbf16> to vector<1x8x8xbf16>
    %53 = vector.extract_strided_slice %34 {offsets = [0, 0, 8], sizes = [1, 8, 8], strides = [1, 1, 1]} : vector<1x8x32xbf16> to vector<1x8x8xbf16>
    %54 = vector.extract_strided_slice %36 {offsets = [0, 0, 8], sizes = [1, 8, 8], strides = [1, 1, 1]} : vector<1x8x32xbf16> to vector<1x8x8xbf16>
    "tpu.trace_start"() <{level = 10 : i32, message = "btq,bsq->bts"}> : () -> ()
    %cst_33 = arith.constant dense<0.000000e+00> : vector<1x8x8xf32>
    %55 = tpu.matmul %52, %53, %cst_33 {dimension_numbers = #tpu.dot_dimension_numbers<[2], [2], [1], [1], [0, 0, 0, 1, 1, 1], [0], [0]>} : vector<1x8x8xbf16>, vector<1x8x8xbf16>, vector<1x8x8xf32> -> vector<1x8x8xf32>
    "tpu.trace_stop"() : () -> ()
    %cst_34 = arith.constant dense<0xFF800000> : vector<1x8xf32>
    %56 = vector.multi_reduction <maximumf>, %55, %cst_34 [2] : vector<1x8x8xf32> to vector<1x8xf32>
    %57 = vector.shape_cast %56 : vector<1x8xf32> to vector<1x8x1xf32>
    %58 = vector.broadcast %57 : vector<1x8x1xf32> to vector<1x8x8xf32>
    %59 = arith.subf %55, %58 : vector<1x8x8xf32>
    %60 = math.exp %59 : vector<1x8x8xf32>
    %cst_35 = arith.constant dense<0.000000e+00> : vector<1x8xf32>
    %61 = vector.multi_reduction <add>, %60, %cst_35 [2] : vector<1x8x8xf32> to vector<1x8xf32>
    %62 = vector.shape_cast %61 : vector<1x8xf32> to vector<1x8x1xf32>
    %63 = vector.broadcast %62 : vector<1x8x1xf32> to vector<1x8x8xf32>
    %64 = arith.divf %60, %63 : vector<1x8x8xf32>
    %65 = arith.truncf %64 : vector<1x8x8xf32> to vector<1x8x8xbf16>
    "tpu.trace_start"() <{level = 10 : i32, message = "bts,bsv->btv"}> : () -> ()
    %cst_36 = arith.constant dense<0.000000e+00> : vector<1x8x8xf32>
    %66 = tpu.matmul %65, %54, %cst_36 {dimension_numbers = #tpu.dot_dimension_numbers<[2], [1], [1], [2], [0, 0, 0, 1, 1, 2], [0], [0]>} : vector<1x8x8xbf16>, vector<1x8x8xbf16>, vector<1x8x8xf32> -> vector<1x8x8xf32>
    "tpu.trace_stop"() : () -> ()
    %67 = vector.extract_strided_slice %32 {offsets = [0, 0, 16], sizes = [1, 8, 8], strides = [1, 1, 1]} : vector<1x8x32xbf16> to vector<1x8x8xbf16>
    %68 = vector.extract_strided_slice %34 {offsets = [0, 0, 16], sizes = [1, 8, 8], strides = [1, 1, 1]} : vector<1x8x32xbf16> to vector<1x8x8xbf16>
    %69 = vector.extract_strided_slice %36 {offsets = [0, 0, 16], sizes = [1, 8, 8], strides = [1, 1, 1]} : vector<1x8x32xbf16> to vector<1x8x8xbf16>
    "tpu.trace_start"() <{level = 10 : i32, message = "btq,bsq->bts"}> : () -> ()
    %cst_37 = arith.constant dense<0.000000e+00> : vector<1x8x8xf32>
    %70 = tpu.matmul %67, %68, %cst_37 {dimension_numbers = #tpu.dot_dimension_numbers<[2], [2], [1], [1], [0, 0, 0, 1, 1, 1], [0], [0]>} : vector<1x8x8xbf16>, vector<1x8x8xbf16>, vector<1x8x8xf32> -> vector<1x8x8xf32>
    "tpu.trace_stop"() : () -> ()
    %cst_38 = arith.constant dense<0xFF800000> : vector<1x8xf32>
    %71 = vector.multi_reduction <maximumf>, %70, %cst_38 [2] : vector<1x8x8xf32> to vector<1x8xf32>
    %72 = vector.shape_cast %71 : vector<1x8xf32> to vector<1x8x1xf32>
    %73 = vector.broadcast %72 : vector<1x8x1xf32> to vector<1x8x8xf32>
    %74 = arith.subf %70, %73 : vector<1x8x8xf32>
    %75 = math.exp %74 : vector<1x8x8xf32>
    %cst_39 = arith.constant dense<0.000000e+00> : vector<1x8xf32>
    %76 = vector.multi_reduction <add>, %75, %cst_39 [2] : vector<1x8x8xf32> to vector<1x8xf32>
    %77 = vector.shape_cast %76 : vector<1x8xf32> to vector<1x8x1xf32>
    %78 = vector.broadcast %77 : vector<1x8x1xf32> to vector<1x8x8xf32>
    %79 = arith.divf %75, %78 : vector<1x8x8xf32>
    %80 = arith.truncf %79 : vector<1x8x8xf32> to vector<1x8x8xbf16>
    "tpu.trace_start"() <{level = 10 : i32, message = "bts,bsv->btv"}> : () -> ()
    %cst_40 = arith.constant dense<0.000000e+00> : vector<1x8x8xf32>
    %81 = tpu.matmul %80, %69, %cst_40 {dimension_numbers = #tpu.dot_dimension_numbers<[2], [1], [1], [2], [0, 0, 0, 1, 1, 2], [0], [0]>} : vector<1x8x8xbf16>, vector<1x8x8xbf16>, vector<1x8x8xf32> -> vector<1x8x8xf32>
    "tpu.trace_stop"() : () -> ()
    %82 = vector.extract_strided_slice %32 {offsets = [0, 0, 24], sizes = [1, 8, 8], strides = [1, 1, 1]} : vector<1x8x32xbf16> to vector<1x8x8xbf16>
    %83 = vector.extract_strided_slice %34 {offsets = [0, 0, 24], sizes = [1, 8, 8], strides = [1, 1, 1]} : vector<1x8x32xbf16> to vector<1x8x8xbf16>
    %84 = vector.extract_strided_slice %36 {offsets = [0, 0, 24], sizes = [1, 8, 8], strides = [1, 1, 1]} : vector<1x8x32xbf16> to vector<1x8x8xbf16>
    "tpu.trace_start"() <{level = 10 : i32, message = "btq,bsq->bts"}> : () -> ()
    %cst_41 = arith.constant dense<0.000000e+00> : vector<1x8x8xf32>
    %85 = tpu.matmul %82, %83, %cst_41 {dimension_numbers = #tpu.dot_dimension_numbers<[2], [2], [1], [1], [0, 0, 0, 1, 1, 1], [0], [0]>} : vector<1x8x8xbf16>, vector<1x8x8xbf16>, vector<1x8x8xf32> -> vector<1x8x8xf32>
    "tpu.trace_stop"() : () -> ()
    %cst_42 = arith.constant dense<0xFF800000> : vector<1x8xf32>
    %86 = vector.multi_reduction <maximumf>, %85, %cst_42 [2] : vector<1x8x8xf32> to vector<1x8xf32>
    %87 = vector.shape_cast %86 : vector<1x8xf32> to vector<1x8x1xf32>
    %88 = vector.broadcast %87 : vector<1x8x1xf32> to vector<1x8x8xf32>
    %89 = arith.subf %85, %88 : vector<1x8x8xf32>
    %90 = math.exp %89 : vector<1x8x8xf32>
    %cst_43 = arith.constant dense<0.000000e+00> : vector<1x8xf32>
    %91 = vector.multi_reduction <add>, %90, %cst_43 [2] : vector<1x8x8xf32> to vector<1x8xf32>
    %92 = vector.shape_cast %91 : vector<1x8xf32> to vector<1x8x1xf32>
    %93 = vector.broadcast %92 : vector<1x8x1xf32> to vector<1x8x8xf32>
    %94 = arith.divf %90, %93 : vector<1x8x8xf32>
    %95 = arith.truncf %94 : vector<1x8x8xf32> to vector<1x8x8xbf16>
    "tpu.trace_start"() <{level = 10 : i32, message = "bts,bsv->btv"}> : () -> ()
    %cst_44 = arith.constant dense<0.000000e+00> : vector<1x8x8xf32>
    %96 = tpu.matmul %95, %84, %cst_44 {dimension_numbers = #tpu.dot_dimension_numbers<[2], [1], [1], [2], [0, 0, 0, 1, 1, 2], [0], [0]>} : vector<1x8x8xbf16>, vector<1x8x8xbf16>, vector<1x8x8xf32> -> vector<1x8x8xf32>
    "tpu.trace_stop"() : () -> ()
    %97 = tpu.concatenate %51, %66, %81, %96 in 2 : vector<1x8x8xf32>, vector<1x8x8xf32>, vector<1x8x8xf32>, vector<1x8x8xf32> -> vector<1x8x32xf32>
    %98 = vector.shape_cast %97 : vector<1x8x32xf32> to vector<8x32xf32>
    %99 = arith.truncf %98 : vector<8x32xf32> to vector<8x32xbf16>
    %c0_45 = arith.constant 0 : index
    %c0_46 = arith.constant 0 : index
    %c0_47 = arith.constant 0 : index
    %100 = vector.load %arg10[%c0_45, %c0_46, %c0_47] : memref<1x32x32xbf16, #tpu.memory_space<vmem>>, vector<1x32x32xbf16>
    %101 = vector.shape_cast %100 : vector<1x32x32xbf16> to vector<32x32xbf16>
    %cst_48 = arith.constant dense<0.000000e+00> : vector<8x32xf32>
    %102 = tpu.matmul %99, %101, %cst_48 {dimension_numbers = #tpu.dot_dimension_numbers<[1], [0], [0], [1], [0, 0, 1, 1], [], []>} : vector<8x32xbf16>, vector<32x32xbf16>, vector<8x32xf32> -> vector<8x32xf32>
    %c0_49 = arith.constant 0 : index
    %c0_50 = arith.constant 0 : index
    %c0_51 = arith.constant 0 : index
    %103 = vector.load %arg11[%c0_49, %c0_50, %c0_51] : memref<1x1x32xf32, #tpu.memory_space<vmem>>, vector<1x1x32xf32>
    %104 = vector.shape_cast %103 : vector<1x1x32xf32> to vector<1x32xf32>
    %105 = vector.broadcast %104 : vector<1x32xf32> to vector<8x32xf32>
    %106 = arith.addf %102, %105 : vector<8x32xf32>
    %107 = arith.addf %106, %4 : vector<8x32xf32>
    %cst_52 = arith.constant dense<0.000000e+00> : vector<8xf32>
    %108 = vector.multi_reduction <add>, %107, %cst_52 [1] : vector<8x32xf32> to vector<8xf32>
    %109 = vector.shape_cast %108 : vector<8xf32> to vector<8x1xf32>
    %cst_53 = arith.constant 3.200000e+01 : f32
    %110 = vector.broadcast %cst_53 : f32 to vector<8x1xf32>
    %111 = arith.divf %109, %110 : vector<8x1xf32>
    %112 = vector.broadcast %111 : vector<8x1xf32> to vector<8x32xf32>
    %113 = arith.subf %107, %112 : vector<8x32xf32>
    %114 = arith.mulf %113, %113 : vector<8x32xf32>
    %cst_54 = arith.constant dense<0.000000e+00> : vector<8xf32>
    %115 = vector.multi_reduction <add>, %114, %cst_54 [1] : vector<8x32xf32> to vector<8xf32>
    %116 = vector.shape_cast %115 : vector<8xf32> to vector<8x1xf32>
    %cst_55 = arith.constant 3.200000e+01 : f32
    %117 = vector.broadcast %cst_55 : f32 to vector<8x1xf32>
    %118 = arith.divf %116, %117 : vector<8x1xf32>
    %119 = vector.broadcast %111 : vector<8x1xf32> to vector<8x32xf32>
    %120 = arith.subf %107, %119 : vector<8x32xf32>
    %cst_56 = arith.constant 9.99999974E-6 : f32
    %121 = vector.broadcast %cst_56 : f32 to vector<8x1xf32>
    %122 = arith.addf %118, %121 : vector<8x1xf32>
    %123 = math.rsqrt %122 : vector<8x1xf32>
    %124 = vector.broadcast %123 : vector<8x1xf32> to vector<8x32xf32>
    %125 = arith.mulf %120, %124 : vector<8x32xf32>
    %126 = vector.broadcast %7 : vector<1x32xf32> to vector<8x32xf32>
    %127 = arith.mulf %125, %126 : vector<8x32xf32>
    %128 = vector.broadcast %9 : vector<1x32xf32> to vector<8x32xf32>
    %129 = arith.addf %127, %128 : vector<8x32xf32>
    %130 = arith.truncf %129 : vector<8x32xf32> to vector<8x32xbf16>
    %c0_57 = arith.constant 0 : index
    %c0_58 = arith.constant 0 : index
    %c0_59 = arith.constant 0 : index
    %131 = vector.load %arg12[%c0_57, %c0_58, %c0_59] : memref<1x32x64xbf16, #tpu.memory_space<vmem>>, vector<1x32x64xbf16>
    %132 = vector.shape_cast %131 : vector<1x32x64xbf16> to vector<32x64xbf16>
    %cst_60 = arith.constant dense<0.000000e+00> : vector<8x64xf32>
    %133 = tpu.matmul %130, %132, %cst_60 {dimension_numbers = #tpu.dot_dimension_numbers<[1], [0], [0], [1], [0, 0, 1, 1], [], []>} : vector<8x32xbf16>, vector<32x64xbf16>, vector<8x64xf32> -> vector<8x64xf32>
    %c0_61 = arith.constant 0 : index
    %c0_62 = arith.constant 0 : index
    %c0_63 = arith.constant 0 : index
    %134 = vector.load %arg13[%c0_61, %c0_62, %c0_63] : memref<1x1x64xf32, #tpu.memory_space<vmem>>, vector<1x1x64xf32>
    %135 = vector.shape_cast %134 : vector<1x1x64xf32> to vector<1x64xf32>
    %136 = vector.broadcast %135 : vector<1x64xf32> to vector<8x64xf32>
    %137 = arith.addf %133, %136 : vector<8x64xf32>
    %cst_64 = arith.constant 0.000000e+00 : f32
    %138 = vector.broadcast %cst_64 : f32 to vector<8x64xf32>
    %139 = arith.maximumf %137, %138 : vector<8x64xf32>
    %140 = arith.truncf %139 : vector<8x64xf32> to vector<8x64xbf16>
    %c0_65 = arith.constant 0 : index
    %c0_66 = arith.constant 0 : index
    %c0_67 = arith.constant 0 : index
    %141 = vector.load %arg14[%c0_65, %c0_66, %c0_67] : memref<1x64x32xbf16, #tpu.memory_space<vmem>>, vector<1x64x32xbf16>
    %142 = vector.shape_cast %141 : vector<1x64x32xbf16> to vector<64x32xbf16>
    %cst_68 = arith.constant dense<0.000000e+00> : vector<8x32xf32>
    %143 = tpu.matmul %140, %142, %cst_68 {dimension_numbers = #tpu.dot_dimension_numbers<[1], [0], [0], [1], [0, 0, 1, 1], [], []>} : vector<8x64xbf16>, vector<64x32xbf16>, vector<8x32xf32> -> vector<8x32xf32>
    %c0_69 = arith.constant 0 : index
    %c0_70 = arith.constant 0 : index
    %c0_71 = arith.constant 0 : index
    %144 = vector.load %arg15[%c0_69, %c0_70, %c0_71] : memref<1x1x32xf32, #tpu.memory_space<vmem>>, vector<1x1x32xf32>
    %145 = vector.shape_cast %144 : vector<1x1x32xf32> to vector<1x32xf32>
    %146 = vector.broadcast %145 : vector<1x32xf32> to vector<8x32xf32>
    %147 = arith.addf %143, %146 : vector<8x32xf32>
    %148 = arith.addf %147, %129 : vector<8x32xf32>
    %cst_72 = arith.constant dense<0.000000e+00> : vector<8xf32>
    %149 = vector.multi_reduction <add>, %148, %cst_72 [1] : vector<8x32xf32> to vector<8xf32>
    %150 = vector.shape_cast %149 : vector<8xf32> to vector<8x1xf32>
    %cst_73 = arith.constant 3.200000e+01 : f32
    %151 = vector.broadcast %cst_73 : f32 to vector<8x1xf32>
    %152 = arith.divf %150, %151 : vector<8x1xf32>
    %153 = vector.broadcast %152 : vector<8x1xf32> to vector<8x32xf32>
    %154 = arith.subf %148, %153 : vector<8x32xf32>
    %155 = arith.mulf %154, %154 : vector<8x32xf32>
    %cst_74 = arith.constant dense<0.000000e+00> : vector<8xf32>
    %156 = vector.multi_reduction <add>, %155, %cst_74 [1] : vector<8x32xf32> to vector<8xf32>
    %157 = vector.shape_cast %156 : vector<8xf32> to vector<8x1xf32>
    %cst_75 = arith.constant 3.200000e+01 : f32
    %158 = vector.broadcast %cst_75 : f32 to vector<8x1xf32>
    %159 = arith.divf %157, %158 : vector<8x1xf32>
    %160 = vector.broadcast %152 : vector<8x1xf32> to vector<8x32xf32>
    %161 = arith.subf %148, %160 : vector<8x32xf32>
    %cst_76 = arith.constant 9.99999974E-6 : f32
    %162 = vector.broadcast %cst_76 : f32 to vector<8x1xf32>
    %163 = arith.addf %159, %162 : vector<8x1xf32>
    %164 = math.rsqrt %163 : vector<8x1xf32>
    %165 = vector.broadcast %164 : vector<8x1xf32> to vector<8x32xf32>
    %166 = arith.mulf %161, %165 : vector<8x32xf32>
    %167 = vector.broadcast %7 : vector<1x32xf32> to vector<8x32xf32>
    %168 = arith.mulf %166, %167 : vector<8x32xf32>
    %169 = vector.broadcast %9 : vector<1x32xf32> to vector<8x32xf32>
    %170 = arith.addf %168, %169 : vector<8x32xf32>
    %171 = vector.shape_cast %170 : vector<8x32xf32> to vector<1x8x32xf32>
    %c0_77 = arith.constant 0 : index
    %c0_78 = arith.constant 0 : index
    %c0_79 = arith.constant 0 : index
    %172 = vector.load %arg21[%c0_77, %c0_78, %c0_79] : memref<1x8x32xf32, #tpu.memory_space<vmem>>, vector<1x8x32xf32>
    tpu.vector_store %arg21[%c0_77, %c0_78, %c0_79], %171 {strides = array<i32>} : memref<1x8x32xf32, #tpu.memory_space<vmem>>, vector<1x8x32xf32>,
    %c1_i32 = arith.constant 1 : i32
    %173 = arith.cmpi eq, %arg1, %c1_i32 : i32
    %174 = arith.extui %173 : i1 to i32
    %c0_i32_80 = arith.constant 0 : i32
    %175 = arith.cmpi ne, %174, %c0_i32_80 : i32
    scf.if %175 {
      %176 = vector.shape_cast %170 : vector<8x32xf32> to vector<1x8x32xf32>
      %177 = vector.extract_strided_slice %176 {offsets = [0, 0, 0], sizes = [1, 1, 32], strides = [1, 1, 1]} : vector<1x8x32xf32> to vector<1x1x32xf32>
      %178 = vector.shape_cast %177 : vector<1x1x32xf32> to vector<1x32xf32>
      %c0_81 = arith.constant 0 : index
      %c0_82 = arith.constant 0 : index
      %179 = vector.load %arg22[%c0_81, %c0_82] : memref<1x256xf32, #tpu.memory_space<vmem>>, vector<1x32xf32>
      tpu.vector_store %arg22[%c0_81, %c0_82], %178 {strides = array<i32>} : memref<1x256xf32, #tpu.memory_space<vmem>>, vector<1x32xf32>,
      %180 = vector.extract_strided_slice %176 {offsets = [0, 1, 0], sizes = [1, 1, 32], strides = [1, 1, 1]} : vector<1x8x32xf32> to vector<1x1x32xf32>
      %181 = vector.shape_cast %180 : vector<1x1x32xf32> to vector<1x32xf32>
      %c0_83 = arith.constant 0 : index
      %c32 = arith.constant 32 : index
      %182 = vector.load %arg22[%c0_83, %c32] : memref<1x256xf32, #tpu.memory_space<vmem>>, vector<1x32xf32>
      tpu.vector_store %arg22[%c0_83, %c32], %181 {strides = array<i32>} : memref<1x256xf32, #tpu.memory_space<vmem>>, vector<1x32xf32>,
      %183 = vector.extract_strided_slice %176 {offsets = [0, 2, 0], sizes = [1, 1, 32], strides = [1, 1, 1]} : vector<1x8x32xf32> to vector<1x1x32xf32>
      %184 = vector.shape_cast %183 : vector<1x1x32xf32> to vector<1x32xf32>
      %c0_84 = arith.constant 0 : index
      %c64 = arith.constant 64 : index
      %185 = vector.load %arg22[%c0_84, %c64] : memref<1x256xf32, #tpu.memory_space<vmem>>, vector<1x32xf32>
      tpu.vector_store %arg22[%c0_84, %c64], %184 {strides = array<i32>} : memref<1x256xf32, #tpu.memory_space<vmem>>, vector<1x32xf32>,
      %186 = vector.extract_strided_slice %176 {offsets = [0, 3, 0], sizes = [1, 1, 32], strides = [1, 1, 1]} : vector<1x8x32xf32> to vector<1x1x32xf32>
      %187 = vector.shape_cast %186 : vector<1x1x32xf32> to vector<1x32xf32>
      %c0_85 = arith.constant 0 : index
      %c96 = arith.constant 96 : index
      %188 = vector.load %arg22[%c0_85, %c96] : memref<1x256xf32, #tpu.memory_space<vmem>>, vector<1x32xf32>
      tpu.vector_store %arg22[%c0_85, %c96], %187 {strides = array<i32>} : memref<1x256xf32, #tpu.memory_space<vmem>>, vector<1x32xf32>,
      %189 = vector.extract_strided_slice %176 {offsets = [0, 4, 0], sizes = [1, 1, 32], strides = [1, 1, 1]} : vector<1x8x32xf32> to vector<1x1x32xf32>
      %190 = vector.shape_cast %189 : vector<1x1x32xf32> to vector<1x32xf32>
      %c0_86 = arith.constant 0 : index
      %c128 = arith.constant 128 : index
      %191 = vector.load %arg22[%c0_86, %c128] : memref<1x256xf32, #tpu.memory_space<vmem>>, vector<1x32xf32>
      tpu.vector_store %arg22[%c0_86, %c128], %190 {strides = array<i32>} : memref<1x256xf32, #tpu.memory_space<vmem>>, vector<1x32xf32>,
      %192 = vector.extract_strided_slice %176 {offsets = [0, 5, 0], sizes = [1, 1, 32], strides = [1, 1, 1]} : vector<1x8x32xf32> to vector<1x1x32xf32>
      %193 = vector.shape_cast %192 : vector<1x1x32xf32> to vector<1x32xf32>
      %c0_87 = arith.constant 0 : index
      %c160 = arith.constant 160 : index
      %194 = vector.load %arg22[%c0_87, %c160] : memref<1x256xf32, #tpu.memory_space<vmem>>, vector<1x32xf32>
      tpu.vector_store %arg22[%c0_87, %c160], %193 {strides = array<i32>} : memref<1x256xf32, #tpu.memory_space<vmem>>, vector<1x32xf32>,
      %195 = vector.extract_strided_slice %176 {offsets = [0, 6, 0], sizes = [1, 1, 32], strides = [1, 1, 1]} : vector<1x8x32xf32> to vector<1x1x32xf32>
      %196 = vector.shape_cast %195 : vector<1x1x32xf32> to vector<1x32xf32>
      %c0_88 = arith.constant 0 : index
      %c192 = arith.constant 192 : index
      %197 = vector.load %arg22[%c0_88, %c192] : memref<1x256xf32, #tpu.memory_space<vmem>>, vector<1x32xf32>
      tpu.vector_store %arg22[%c0_88, %c192], %196 {strides = array<i32>} : memref<1x256xf32, #tpu.memory_space<vmem>>, vector<1x32xf32>,
      %198 = vector.extract_strided_slice %176 {offsets = [0, 7, 0], sizes = [1, 1, 32], strides = [1, 1, 1]} : vector<1x8x32xf32> to vector<1x1x32xf32>
      %199 = vector.shape_cast %198 : vector<1x1x32xf32> to vector<1x32xf32>
      %c0_89 = arith.constant 0 : index
      %c224 = arith.constant 224 : index
      %200 = vector.load %arg22[%c0_89, %c224] : memref<1x256xf32, #tpu.memory_space<vmem>>, vector<1x32xf32>
      tpu.vector_store %arg22[%c0_89, %c224], %199 {strides = array<i32>} : memref<1x256xf32, #tpu.memory_space<vmem>>, vector<1x32xf32>,
      %c0_90 = arith.constant 0 : index
      %c0_91 = arith.constant 0 : index
      %201 = vector.load %arg22[%c0_90, %c0_91] : memref<1x256xf32, #tpu.memory_space<vmem>>, vector<1x256xf32>
      %202 = arith.truncf %201 : vector<1x256xf32> to vector<1x256xbf16>
      %c0_92 = arith.constant 0 : index
      %c0_93 = arith.constant 0 : index
      %203 = vector.load %arg18[%c0_92, %c0_93] : memref<256x5xbf16, #tpu.memory_space<vmem>>, vector<256x5xbf16>
      %cst_94 = arith.constant dense<0.000000e+00> : vector<1x5xf32>
      %204 = tpu.matmul %202, %203, %cst_94 {dimension_numbers = #tpu.dot_dimension_numbers<[1], [0], [0], [1], [0, 0, 1, 1], [], []>} : vector<1x256xbf16>, vector<256x5xbf16>, vector<1x5xf32> -> vector<1x5xf32>
      %c0_95 = arith.constant 0 : index
      %c0_96 = arith.constant 0 : index
      %205 = vector.load %arg19[%c0_95, %c0_96] : memref<1x5xf32, #tpu.memory_space<vmem>>, vector<1x5xf32>
      %206 = arith.addf %204, %205 : vector<1x5xf32>
      %c0_97 = arith.constant 0 : index
      %c0_98 = arith.constant 0 : index
      %c0_99 = arith.constant 0 : index
      %207 = vector.load %arg20[%c0_97, %c0_98, %c0_99] : memref<1x1x5xf32, #tpu.memory_space<vmem>>, vector<1x1x5xf32>
      %208 = vector.shape_cast %207 : vector<1x1x5xf32> to vector<1x5xf32>
      %209 = vector.shape_cast %206 : vector<1x5xf32> to vector<1x1x5xf32>
      tpu.vector_store %arg20[%c0_97, %c0_98, %c0_99], %209 {strides = array<i32>} : memref<1x1x5xf32, #tpu.memory_space<vmem>>, vector<1x1x5xf32>,
    } else {
    }
    return
  }
  func.func @transform_0(%arg0: i32, %arg1: i32) -> (i32, i32, i32) {
    %c0_i32 = arith.constant 0 : i32
    %c0_i32_0 = arith.constant 0 : i32
    %c0_i32_1 = arith.constant 0 : i32
    return %arg0, %c0_i32, %c0_i32_0 : i32, i32, i32
  }
  func.func @transform_1(%arg0: i32, %arg1: i32) -> (i32, i32, i32) {
    %c0_i32 = arith.constant 0 : i32
    %c0_i32_0 = arith.constant 0 : i32
    %c0_i32_1 = arith.constant 0 : i32
    %c0_i32_2 = arith.constant 0 : i32
    return %c0_i32, %c0_i32_0, %c0_i32_1 : i32, i32, i32
  }
  func.func @transform_2(%arg0: i32, %arg1: i32) -> (i32, i32, i32) {
    %c0_i32 = arith.constant 0 : i32
    %c0_i32_0 = arith.constant 0 : i32
    %c0_i32_1 = arith.constant 0 : i32
    return %arg1, %c0_i32, %c0_i32_0 : i32, i32, i32
  }
  func.func @transform_3(%arg0: i32, %arg1: i32) -> (i32, i32, i32) {
    %c0_i32 = arith.constant 0 : i32
    %c0_i32_0 = arith.constant 0 : i32
    %c0_i32_1 = arith.constant 0 : i32
    return %arg1, %c0_i32, %c0_i32_0 : i32, i32, i32
  }
  func.func @transform_4(%arg0: i32, %arg1: i32) -> (i32, i32, i32) {
    %c0_i32 = arith.constant 0 : i32
    %c0_i32_0 = arith.constant 0 : i32
    %c0_i32_1 = arith.constant 0 : i32
    return %arg1, %c0_i32, %c0_i32_0 : i32, i32, i32
  }
  func.func @transform_5(%arg0: i32, %arg1: i32) -> (i32, i32, i32) {
    %c0_i32 = arith.constant 0 : i32
    %c0_i32_0 = arith.constant 0 : i32
    %c0_i32_1 = arith.constant 0 : i32
    return %arg1, %c0_i32, %c0_i32_0 : i32, i32, i32
  }
  func.func @transform_6(%arg0: i32, %arg1: i32) -> (i32, i32, i32) {
    %c0_i32 = arith.constant 0 : i32
    %c0_i32_0 = arith.constant 0 : i32
    %c0_i32_1 = arith.constant 0 : i32
    return %arg1, %c0_i32, %c0_i32_0 : i32, i32, i32
  }
  func.func @transform_7(%arg0: i32, %arg1: i32) -> (i32, i32, i32) {
    %c0_i32 = arith.constant 0 : i32
    %c0_i32_0 = arith.constant 0 : i32
    %c0_i32_1 = arith.constant 0 : i32
    return %arg1, %c0_i32, %c0_i32_0 : i32, i32, i32
  }
  func.func @transform_8(%arg0: i32, %arg1: i32) -> (i32, i32, i32) {
    %c0_i32 = arith.constant 0 : i32
    %c0_i32_0 = arith.constant 0 : i32
    %c0_i32_1 = arith.constant 0 : i32
    return %arg1, %c0_i32, %c0_i32_0 : i32, i32, i32
  }
  func.func @transform_9(%arg0: i32, %arg1: i32) -> (i32, i32, i32) {
    %c0_i32 = arith.constant 0 : i32
    %c0_i32_0 = arith.constant 0 : i32
    %c0_i32_1 = arith.constant 0 : i32
    return %arg1, %c0_i32, %c0_i32_0 : i32, i32, i32
  }
  func.func @transform_10(%arg0: i32, %arg1: i32) -> (i32, i32, i32) {
    %c0_i32 = arith.constant 0 : i32
    %c0_i32_0 = arith.constant 0 : i32
    %c0_i32_1 = arith.constant 0 : i32
    return %arg1, %c0_i32, %c0_i32_0 : i32, i32, i32
  }
  func.func @transform_11(%arg0: i32, %arg1: i32) -> (i32, i32, i32) {
    %c0_i32 = arith.constant 0 : i32
    %c0_i32_0 = arith.constant 0 : i32
    %c0_i32_1 = arith.constant 0 : i32
    return %arg1, %c0_i32, %c0_i32_0 : i32, i32, i32
  }
  func.func @transform_12(%arg0: i32, %arg1: i32) -> (i32, i32, i32) {
    %c0_i32 = arith.constant 0 : i32
    %c0_i32_0 = arith.constant 0 : i32
    %c0_i32_1 = arith.constant 0 : i32
    return %arg1, %c0_i32, %c0_i32_0 : i32, i32, i32
  }
  func.func @transform_13(%arg0: i32, %arg1: i32) -> (i32, i32, i32) {
    %c0_i32 = arith.constant 0 : i32
    %c0_i32_0 = arith.constant 0 : i32
    %c0_i32_1 = arith.constant 0 : i32
    return %arg1, %c0_i32, %c0_i32_0 : i32, i32, i32
  }
  func.func @transform_14(%arg0: i32, %arg1: i32) -> (i32, i32, i32) {
    %c0_i32 = arith.constant 0 : i32
    %c0_i32_0 = arith.constant 0 : i32
    %c0_i32_1 = arith.constant 0 : i32
    return %arg1, %c0_i32, %c0_i32_0 : i32, i32, i32
  }
  func.func @transform_15(%arg0: i32, %arg1: i32) -> (i32, i32, i32) {
    %c0_i32 = arith.constant 0 : i32
    %c0_i32_0 = arith.constant 0 : i32
    %c0_i32_1 = arith.constant 0 : i32
    return %arg1, %c0_i32, %c0_i32_0 : i32, i32, i32
  }
  func.func @transform_16(%arg0: i32, %arg1: i32) -> (i32, i32) {
    %c0_i32 = arith.constant 0 : i32
    %c0_i32_0 = arith.constant 0 : i32
    %c0_i32_1 = arith.constant 0 : i32
    return %c0_i32, %c0_i32_0 : i32, i32
  }
  func.func @transform_17(%arg0: i32, %arg1: i32) -> (i32, i32) {
    %c0_i32 = arith.constant 0 : i32
    %c0_i32_0 = arith.constant 0 : i32
    %c0_i32_1 = arith.constant 0 : i32
    return %c0_i32, %c0_i32_0 : i32, i32
  }
  func.func @transform_18(%arg0: i32, %arg1: i32) -> (i32, i32, i32) {
    %c0_i32 = arith.constant 0 : i32
    %c0_i32_0 = arith.constant 0 : i32
    %c0_i32_1 = arith.constant 0 : i32
    return %arg0, %c0_i32, %c0_i32_0 : i32, i32, i32
  }
}

</mosaic_0001>

<bundles_post_ra>
// kernel: tpu_custom_call.1
= control target key start
LH: loop header
LB: loop body
LE: loop exit
PB: predicated region body
PF: predicated region fallthrough
CT: control target
= control target key end

     0   :  { %s3234_s0 = inlined_call_operand.vmem [shape: f32[2,8,32], index: 0, kind: input, shape index: {}]   ;;  %s3235_s1 = inlined_call_operand.vmem [shape: f32[1,8,32], index: 1, kind: input, shape index: {}]   ;;  %s3236_s2 = inlined_call_operand.vmem [shape: bf16[2,32,32], index: 2, kind: input, shape index: {}]   ;;  %s3237_s3 = inlined_call_operand.vmem [shape: f32[2,1,32], index: 3, kind: input, shape index: {}]   ;;  %s3238_s4 = inlined_call_operand.vmem [shape: bf16[2,32,32], index: 4, kind: input, shape index: {}]   ;;  %s3239_s5 = inlined_call_operand.vmem [shape: f32[2,1,32], index: 5, kind: input, shape index: {}]   ;;  %s3240_s6 = inlined_call_operand.vmem [shape: bf16[2,32,32], index: 6, kind: input, shape index: {}]   ;;  %s3241_s7 = inlined_call_operand.vmem [shape: f32[2,1,32], index: 7, kind: input, shape index: {}]   ;;  %s3242_s8 = inlined_call_operand.vmem [shape: bf16[2,32,32], index: 8, kind: input, shape index: {}]   ;;  %s3243_s9 = inlined_call_operand.vmem [shape: f32[2,1,32], index: 9, kind: input, shape index: {}]   ;;  %s3244_s10 = inlined_call_operand.vmem [shape: bf16[2,32,64], index: 10, kind: input, shape index: {}]   ;;  %s3245_s11 = inlined_call_operand.vmem [shape: f32[2,1,64], index: 11, kind: input, shape index: {}]   ;;  %s3246_s12 = inlined_call_operand.vmem [shape: bf16[2,64,32], index: 12, kind: input, shape index: {}]   ;;  %s3247_s13 = inlined_call_operand.vmem [shape: f32[2,1,32], index: 13, kind: input, shape index: {}]   ;;  %s3248_s14 = inlined_call_operand.vmem [shape: f32[2,1,32], index: 14, kind: input, shape index: {}]   ;;  %s3249_s15 = inlined_call_operand.vmem [shape: f32[2,1,32], index: 15, kind: input, shape index: {}]   ;;  %s3250_s16 = inlined_call_operand.vmem [shape: bf16[256,5], index: 16, kind: input, shape index: {}]   ;;  %s3251_s17 = inlined_call_operand.vmem [shape: f32[1,5], index: 17, kind: input, shape index: {}]   ;;  %s3252_s18 = inlined_call_operand.hbm [shape: f32[2,1,5], index: 18, kind: output, shape index: {}]  }
   0x1   :  { %3269 = sst [smem:[#allocation21_spill]] %s3234_s0 }
   0x2   :  { %3270 = sst [smem:[#allocation22_spill]] %s3235_s1 }
   0x3   :  { %3271 = sst [smem:[#allocation23_spill]] %s3236_s2 }
   0x4   :  { %3272 = sst [smem:[#allocation24_spill]] %s3238_s4 }
   0x5   :  { %3273 = sst [smem:[#allocation25_spill]] %s3240_s6 }
   0x6   :  { %3274 = sst [smem:[#allocation26_spill]] %s3242_s8 }
   0x7   :  { %3275 = sst [smem:[#allocation27_spill]] %s3244_s10 }
   0x8   :  { %3276 = sst [smem:[#allocation28_spill]] %s3248_s14 }
   0x9   :  { %3277 = sst [smem:[#allocation29_spill]] %s3249_s15 }
   0xa   :  { %3278 = sst [smem:[#allocation30_spill]] %s3250_s16 }
   0xb   :  { %3279 = sst [smem:[#allocation31_spill]] %s3251_s17 }
   0xc   :  { %3280 = sst [smem:[#allocation32_spill]] %s3252_s18 }
   0xd   :  { %23 = vsyncpa [#allocation5], 0 }
   0xe   :  { %25 = vsyncpa [#allocation5 + $0x1], 0  ;;  %s2821_s27 = smov 0   ;;  %s2823_s28 = smov 0  }
   0xf   :  { %s2825_s29 = smov 0   ;;  %s2827_s30 = smov 0  }
  0x10   :  { %s2829_s0 = smov 0   ;;  %s2831_s19 = smov 0  }
  0x11   :  { %s2833_s1 = smov 0   ;;  %s2835_s20 = smov 0  }
  0x12 LB: > { %3281 = sst [smem:[#allocation7_spill]] %s2683_s27  ;;  %s2247_s21 = sadd.s32 4294967295, %s2711_s20   ;;  %s2711_s20 = sphi %s2835_s20, %s31_s20   ;;  %s2707_s1 = sphi %s2833_s1, %s3332_s1   ;;  %s2703_s19 = sphi %s2831_s19, %s3331_s19   ;;  %s2699_s0 = sphi %s2829_s0, %s3330_s0   ;;  %s2695_s30 = sphi %s2827_s30, %s3329_s30   ;;  %s2691_s29 = sphi %s2825_s29, %s3328_s29   ;;  %s2687_s28 = sphi %s2823_s28, %s3334_s28   ;;  %s2683_s27 = sphi %s2821_s27, %s3333_s27  }
  0x13   : > { %3282 = sst [smem:[#allocation8_spill]] %s2691_s29  ;;  %s2248_s22 = sadd.s32 4294967294, %s2711_s20  }
  0x14   : > { %3283 = sst [smem:[#allocation9_spill]] %s2695_s30  ;;  %s40_s2 = sadd.s32 1, %s2703_s19 }
  0x15   : > { %3284 = sst [smem:[#allocation10_spill]] %s2699_s0  ;;  %p41_p0 = scmp.ge.s32.totalorder %s40_s2, 2 }
  0x16   : > { %3285 = sst [smem:[#allocation11_spill]] %s2703_s19  ;;  %s43_s23 = sadd.s32 1, %s2707_s1 }
  0x17   : > { %3286 = sst [smem:[#allocation12_spill]] %s2707_s1  ;;  %p513_p1 = scmp.ne.s32.totalorder %s2691_s29, %s2687_s28 }
  0x18   : > { %3287 = sst [smem:[#allocation13_spill]] %s2711_s20  ;;  %p514_p2 = scmp.eq.s32.totalorder %s2247_s21, 3 }
  0x19   : > { %s3336_s2 = smov (%p41_p0, %s40_s2), 0  ;;  %s3338_s23 = smov (!%p41_p0, %s43_s23), %s2707_s1 }
  0x1a   : > { %3288 = sst [smem:[#allocation14_spill]] %s3336_s2  ;;  %p2870_p3 = por %p514_p2, %p513_p1 }
  0x1b   : > { %p519_p4 = scmp.ne.s32.totalorder %s2687_s28, %s2683_s27  ;;  %p45_p5 = scmp.ge.s32.totalorder %s3338_s23, 2 }
  0x1c   : > { %s3289_s24 = scalar_select %p2870_p3, 1, 0 }
  0x1d   : > { %p520_p6 = scmp.eq.s32.totalorder %s2248_s22, 3  ;;  %p2251_p7 = scmp.ge.s32.totalorder %s2711_s20, 1 }
  0x1e   : > { %3290 = sst [smem:[#allocation15_spill]] %s3289_s24  ;;  %p650_p8 = scmp.lt.s32.totalorder %s2711_s20, 5 }
  0x1f   : > { %s3340_s23 = smov (%p45_p5, %s3338_s23), 0  ;;  %p2880_p9 = por %p520_p6, %p519_p4 }
  0x20   : > { %3291 = sst [smem:[#allocation16_spill]] %s3340_s23  ;;  %p651_p10 = pnand %p2251_p7, %p650_p8 }
  0x21   : > { %s3292_s25 = scalar_select %p2880_p9, 1, 0 }
  0x22   : > { %s500_s26 = ssub.s32 %s2707_s1, %s3340_s23  ;;  %s503_s21 = sadd.s32 1, %s2691_s29 }
  0x23   : > { %3293 = sst [smem:[#allocation17_spill]] %s3292_s25  ;;  %p501_p11 = scmp.eq.s32.totalorder %s500_s26, 0 }
  0x24   : > { %654 = sbr.rel (%p651_p10) target bundleno = 2826 (0xb0a), region = 92 }
  0x25   : > { %s2888_s2 = scalar_select %p501_p11, %s2691_s29, %s503_s21  }
  0x27   : > { %3294 = sst [smem:[#allocation18_spill]] %s2888_s2 }
  0x29   : > { %p756_p12 = scmp.lt.s32.totalorder %s2699_s0, 1  ;;  %p760_p13 = scmp.lt.s32.totalorder %s2695_s30, 1 }
  0x2a   : > { %s3295_s1 = sld [smem:[#allocation21_spill]] }
  0x2b   : > { %s757_s19 = scalar_select %p756_p12, %s2699_s0, 1 }
  0x2c   : > { %s2895_s27 = scalar_select %p760_p13, %s2695_s30, 1 }
  0x2d   : > { %s2252_s26 = sshll.u32 %s757_s19, 3  ;;  %s3296_s20 = sld [smem:[#allocation23_spill]] }
  0x2e   : > { %s2322_s22 = sshll.u32 %s2895_s27, 4  ;;  %s3298_s4 = sld [smem:[#allocation24_spill]] }
  0x2f   : > { %s3299_s6 = sld [smem:[#allocation25_spill]]  ;;  %s2327_s29 = sshll.u32 %s2895_s27, 5 }
  0x30   : > { %s759_s2 = scalar_lea.vmem %s3295_s1, %s2252_s26  ;;  %s3300_s8 = sld [smem:[#allocation26_spill]] }
  0x31   : > { %s3301_s10 = sld [smem:[#allocation27_spill]]  ;;  %s3305_s26 = sand.u32 1, %s2687_s28  }
  0x32   : > { %s3303_s17 = sld [smem:[#allocation28_spill]]  ;;  %s2964_s21 = scalar_lea.vmem [#allocation4], %s3305_s26 }
  0x33   : > { %s2904_s18 = scalar_lea.vmem %s3296_s20, %s2322_s22 }
  0x34   : > { %3297 = sst [smem:[#allocation19_spill]] %s2904_s18  ;;  %s772_s19 = scalar_lea.vmem %s3298_s4, %s2322_s22 }
  0x35   : > { %s2920_s14 = scalar_lea.vmem %s3299_s6, %s2322_s22  ;;  %s807_s18 = scalar_lea.vmem %s3247_s13, %s2895_s27 }
  0x36   : > { %s2929_s24 = scalar_lea.vmem %s3300_s8, %s2322_s22  ;;  %s2952_s8 = scalar_lea.vmem %s3246_s12, %s2327_s29 }
  0x37   : > { %s2938_s1 = scalar_lea.vmem %s3301_s10, %s2322_s22  ;;  %s3304_s10 = sld [smem:[#allocation29_spill]] }
  0x38   : > { %3302 = sst [smem:[#allocation20_spill]] %s2938_s1  ;;  %s810_s15 = scalar_lea.vmem %s3303_s17, %s2895_s27 }
  0x39   : > { %s3306_s4 = sld [smem:[#allocation9_spill]] }
  0x3d   : > { %s813_s1 = scalar_lea.vmem %s3304_s10, %s2895_s27 }
  0x3f   : > { %p2265_p0 = scmp.ne.s32.totalorder %s3306_s4, 0 }
  0x40   : > { %s3307_s6 = sld [smem:[#allocation22_spill]] (!%p2265_p0) }
  0x41   : > { %818 = sbr.rel (%p2265_p0) target bundleno = 75 (0x4b), region = 96 }
  0x46   : > { %v819_v0 = vld [vmem:[%s759_s2] sm:$0xff]  ;;  %vm822_vm0 = vcmask 261120  }
  0x47   : > { %v820_v1 = vld [vmem:[%s3307_s6] sm:$0xff] }
  0x48   : > { %v821_v2 = vadd.f32 %v820_v1, %v819_v0 }
  0x4a   : > { %823 = vst.msk [vmem:[#allocation2] sm:$0xff] %vm822_vm0, %v821_v2 }
  0x4b PF: > { %v2569_v3 = vld [vmem:[%s772_s19 + $0x8] sm:$0xff]   ;;  %s3308_s17 = sld [smem:[#allocation19_spill]]  ;;  %v2713_v4 = vmov 0.0   ;;  %v2571_v6 = vld [vmem:[%s772_s19] sm:$0xff]   ;;  %vm2714_vm1 = vmmov 0   ;;  %vm851_vm2 = vcmask 261120   ;;  %s3309_s2 = scalar_lea.vmem %s3239_s5, %s2895_s27 }
  0x4c   : > { %2394 = vmatprep.subr.bf16.mxu1 %v2713_v4  ;;  %2386 = vmatprep.subr.bf16.mxu0 %v2713_v4  ;;  %v2270_v10 = vld [vmem:[%s3309_s2] ss:$0 sm:$0xff]  ;;  %s3310_s0 = scalar_lea.vmem %s3237_s3, %s2895_s27  ;;  %vm1024_vm3 = vcmask 64512   ;;  %s2715_s16 = smov 112   ;;  %v2573_v25 = vld [vmem:[%s2920_s14 + $0x8] sm:$0xff]   ;;  %vm1086_vm4 = vcmask 1043456  }
  0x4d   : > { %2395 = vmatpush3.bf16.msra.mxu1 %v2569_v3  ;;  %2398 = vmatprep.mubr.msk.bf16.mxu1 %vm2714_vm1, %v2713_v4  ;;  %v2266_v11 = vld [vmem:[%s3310_s0] ss:$0 sm:$0xff]  ;;  %s2716_s30 = smov 120   ;;  %s2717_s22 = smov 104   ;;  %vm1476_vm5 = vcmask 130048   ;;  %vm1478_vm6 = vcmask 195584  }
  0x4e   : > { %2396 = vmatprep.subr.bf16.mxu1 %v2713_v4  ;;  %2390 = vmatprep.mubr.msk.bf16.mxu0 %vm2714_vm1, %v2713_v4  ;;  %v2574_v26 = vld [vmem:[%s2920_s14] sm:$0xff]   ;;  %s3311_s26 = scalar_lea.vmem %s3241_s7, %s2895_s27  ;;  %s2718_s25 = smov 8   ;;  %vm1684_vm7 = vcmask 523264  }
  0x4f   : > { %v2274_v41 = vld [vmem:[%s3311_s26] ss:$0 sm:$0xff]  ;;  %s2719_s20 = smov 16   ;;  %s2720_s6 = smov 24  }
  0x50   : > { %s3312_s4 = scalar_lea.vmem %s3243_s9, %s2895_s27  ;;  %s3313_s10 = sld [smem:[#allocation20_spill]] }
  0x51   : > { %v2570_v5 = vld [vmem:[%s3308_s17 + $0x8] sm:$0xff]   ;;  %v2572_v7 = vld [vmem:[%s3308_s17] sm:$0xff]   ;;  %2397 = vmatpush3.bf16.msra.mxu1 %v2571_v6  ;;  %s3316_s14 = scalar_lea.vmem %s3245_s11, %s2895_s27 }
  0x52   : > { %2387 = vmatpush3.bf16.msra.mxu0 %v2570_v5  ;;  %v2978_v8 = vld [vmem:[#allocation2] sm:$0xff]  ;;  %2410 = vmatprep.subr.bf16.mxu1 %v2713_v4 }
  0x53   : > { %2388 = vmatprep.subr.bf16.mxu0 %v2713_v4  ;;  %v825_v9 = vpack.c.bf16 %v2978_v8, %v2978_v8 }
  0x55   : > { %2399 = vmatmul.mubr.msk.bf16.vlgmr.msra.gmra.mxu1 %vm851_vm2, %v825_v9 }
  0x56   : > { %2389 = vmatpush3.bf16.msra.mxu0 %v2572_v7  ;;  %2412 = vmatprep.mubr.msk.bf16.mxu1 %vm2714_vm1, %v2713_v4 }
  0x57   : > { %2402 = vmatprep.subr.bf16.mxu0 %v2713_v4 }
  0x59   : > { %2391 = vmatmul.mubr.msk.bf16.vlgmr.msra.gmra.mxu0 %vm851_vm2, %v825_v9 }
  0x5a   : > { %2406 = vmatprep.mubr.msk.bf16.mxu0 %vm2714_vm1, %v2713_v4  ;;  %2403 = vmatpush3.bf16.msra.mxu0 %v2573_v25 }
  0x5b   : > { %2404 = vmatprep.subr.bf16.mxu0 %v2713_v4 }
  0x5e   : > { %2405 = vmatpush3.bf16.msra.mxu0 %v2574_v26 }
  0x5f   : > { %2416 = vmatprep.subr.bf16.mxu0 %v2713_v4 }
  0x61   : > { %2407 = vmatmul.mubr.msk.bf16.vlgmr.msra.gmra.mxu0 %vm851_vm2, %v825_v9 }
  0x62   : > { %2418 = vmatprep.mubr.msk.bf16.mxu0 %vm2714_vm1, %v2713_v4 }
 0x115   : > { %v952_v12 = vpop.f32.mrf.mxu1 }
 0x116   : > { %v953_v13 = vadd.f32 %v2270_v10, %v952_v12 }
 0x117   : > { %v2400_v16 = vpop.f32.mrf.mxu1 }
 0x118   : > { %v1022_v17 = vpack.c.bf16 %v953_v13, %v953_v13 }
 0x119   : > { %v889_v14 = vpop.f32.mrf.mxu0  ;;  %v955_v19 = vpop.f32.mrf.mxu1 }
 0x11a   : > { %v890_v15 = vadd.f32 %v2266_v11, %v889_v14  ;;  %1245 = vrot.lane.b32.xlu1 %v1022_v17, %s2715_s16  ;;  %1134 = vrot.lane.b32.xlu0 %v1022_v17, %s2716_s30  ;;  %v1029_v22 = vsel %vm1024_vm3, %v1022_v17, 0 }
 0x11b   : > { %v2392_v18 = vpop.f32.mrf.mxu0  ;;  %v2401_v23 = vpop.f32.mrf.mxu1  ;;  %2411 = vmatpush3.bf16.xpose.msra.mxu1 %v1029_v22 }
 0x11c   : > { %v1021_v20 = vpack.c.bf16 %v890_v15, %v890_v15  ;;  %2422 = vmatprep.subr.bf16.mxu1 %v2713_v4 }
 0x11d   : > { %v892_v21 = vpop.f32.mrf.mxu0 }
 0x11e   : > { %1243 = vrot.lane.b32.xlu1 %v1021_v20, %s2715_s16  ;;  %1131 = vrot.lane.b32.xlu0 %v1021_v20, %s2716_s30 }
 0x11f   : > { %v2393_v24 = vpop.f32.mrf.mxu0 }
 0x121   : > { %v1015_v42 = vpop.f32.mrf.mxu0 }
 0x122   : > { %1353 = vrot.lane.b32.xlu1 %v1021_v20, %s2717_s22  ;;  %1355 = vrot.lane.b32.xlu0 %v1022_v17, %s2717_s22  ;;  %v1016_v43 = vadd.f32 %v2274_v41, %v1015_v42 }
 0x123   : > { %2413 = vmatmul.mubr.msk.bf16.vlgmr.msra.gmra.mxu1 %vm1024_vm3, %v1021_v20  ;;  %v2408_v44 = vpop.f32.mrf.mxu0 }
 0x124   : > { %2424 = vmatprep.mubr.msk.bf16.mxu1 %vm2714_vm1, %v2713_v4  ;;  %v1023_v45 = vpack.c.bf16 %v1016_v43, %v1016_v43 }
 0x125   : > { %v1018_v46 = vpop.f32.mrf.mxu0 }
 0x126   : > { %v1088_v47 = vsel %vm1086_vm4, %v1023_v45, 0 }
 0x127   : > { %v2409_v48 = vpop.f32.mrf.mxu0  ;;  %2417 = vmatpush3.bf16.msra.mxu0 %v1088_v47 }
 0x128   : > { %2428 = vmatprep.subr.bf16.mxu0 %v2713_v4  ;;  %v2575_v48 = vld [vmem:[%s2929_s24 + $0x8] sm:$0xff]  }
 0x18c   : > { %v1135_v27 = vpop.permute.xlu0 %1134  ;;  %v1246_v29 = vpop.permute.xlu1 %1245 }
 0x18d   : > { %v1140_v28 = vsel %vm1024_vm3, %v1135_v27, 0  ;;  %v1251_v31 = vsel %vm1024_vm3, %v1246_v29, 0 }
 0x18e   : > { %2423 = vmatpush3.bf16.xpose.msra.mxu1 %v1140_v28 }
 0x18f   : > { %2434 = vmatprep.subr.bf16.mxu1 %v2713_v4 }
 0x190   : > { %v1132_v30 = vpop.permute.xlu0 %1131  ;;  %v1244_v33 = vpop.permute.xlu1 %1243 }
 0x194   : > { %v1356_v32 = vpop.permute.xlu0 %1355  ;;  %v1354_v35 = vpop.permute.xlu1 %1353 }
 0x195   : > { %2425 = vmatmul.mubr.msk.bf16.vlgmr.msra.gmra.mxu1 %vm1024_vm3, %v1132_v30  ;;  %v1361_v34 = vsel %vm1024_vm3, %v1356_v32, 0 }
 0x196   : > { %2435 = vmatpush3.bf16.xpose.msra.mxu1 %v1251_v31  ;;  %2436 = vmatprep.mubr.msk.bf16.mxu1 %vm2714_vm1, %v2713_v4 }
 0x197   : > { %2446 = vmatprep.subr.bf16.mxu1 %v2713_v4 }
 0x19d   : > { %2437 = vmatmul.mubr.msk.bf16.vlgmr.msra.gmra.mxu1 %vm1024_vm3, %v1244_v33 }
 0x19e   : > { %2447 = vmatpush3.bf16.xpose.msra.mxu1 %v1361_v34  ;;  %2448 = vmatprep.mubr.msk.bf16.mxu1 %vm2714_vm1, %v2713_v4 }
 0x19f   : > { %2458 = vmatprep.subr.bf16.mxu1 %v2713_v4 }
 0x1a5   : > { %2449 = vmatmul.mubr.msk.bf16.vlgmr.msra.gmra.mxu1 %vm1024_vm3, %v1354_v35 }
 0x1a6   : > { %2462 = vmatprep.mubr.msk.bf16.mxu1 %vm2714_vm1, %v2713_v4  ;;  %2459 = vmatpush3.bf16.msra.mxu1 %v2575_v48 }
 0x1a7   : > { %2460 = vmatprep.subr.bf16.mxu1 %v2713_v4 }
 0x1e3   : > { %v1065_v36 = vpop.f32.mrf.mxu1 }
 0x1e4   : > { %v1071_v37 = vsel %vm1024_vm3, %v1065_v36, -inf }
 0x1e5   : > { %1072 = vmax.xlane.f32.xlu0 %v1071_v37  ;;  %v2414_v38 = vpop.f32.mrf.mxu1 }
 0x1e7   : > { %v1068_v39 = vpop.f32.mrf.mxu1 }
 0x1e9   : > { %v2415_v40 = vpop.f32.mrf.mxu1 }
 0x255   : > { %v1176_v49 = vpop.f32.mrf.mxu1 }
 0x256   : > { %v1182_v50 = vsel %vm1024_vm3, %v1176_v49, -inf }
 0x257   : > { %1183 = vmax.xlane.f32.xlu1 %v1182_v50  ;;  %v2426_v51 = vpop.f32.mrf.mxu1 }
 0x258   : > { %v2576_v51 = vld [vmem:[%s2929_s24] sm:$0xff]  }
 0x259   : > { %v1179_v52 = vpop.f32.mrf.mxu1  ;;  %2461 = vmatpush3.bf16.msra.mxu1 %v2576_v51 }
 0x25a   : > { %2474 = vmatprep.subr.bf16.mxu1 %v2713_v4 }
 0x25b   : > { %v2427_v53 = vpop.f32.mrf.mxu1 }
 0x25d   : > { %v1287_v54 = vpop.f32.mrf.mxu1 }
 0x25e   : > { %v1293_v55 = vsel %vm1024_vm3, %v1287_v54, -inf }
 0x25f   : > { %1294 = vmax.xlane.f32.xlu0 %v1293_v55  ;;  %v2438_v56 = vpop.f32.mrf.mxu1 }
 0x261   : > { %v1290_v57 = vpop.f32.mrf.mxu1 }
 0x263   : > { %v2439_v58 = vpop.f32.mrf.mxu1 }
 0x265   : > { %v1397_v59 = vpop.f32.mrf.mxu1 }
 0x266   : > { %v1403_v60 = vsel %vm1024_vm3, %v1397_v59, -inf }
 0x267   : > { %1404 = vmax.xlane.f32.xlu0 %v1403_v60  ;;  %v2450_v61 = vpop.f32.mrf.mxu1 }
 0x269   : > { %v1400_v62 = vpop.f32.mrf.mxu1 }
 0x26b   : > { %v2451_v63 = vpop.f32.mrf.mxu1 }
 0x26e   : > { %v1073_v0 = vpop.xlane.xlu0 %1072 }
 0x26f   : > { %v1074_v1 = vsub.f32 %v1065_v36, %v1073_v0 }
 0x271   : > { %v1075_v2 = vmul.f32 1.442695, %v1074_v1 }
 0x273   : > { %2583 = vpow2.f32 %v1075_v2 }
 0x280   : > { %v2584_v3 = vpop.eup %2583 }
 0x281   : > { %v1077_v5 = vsel %vm1024_vm3, %v2584_v3, 0.0 }
 0x282   : > { %1078 = vadd.xlane.f32.xlu1 %v1077_v5 }
 0x293   : > { %1195 = vrot.lane.b32.xlu1 %v1023_v45, %s2716_s30 }
 0x2e0   : > { %v1184_v6 = vpop.xlane.xlu1 %1183 }
 0x2e1   : > { %v1185_v7 = vsub.f32 %v1176_v49, %v1184_v6  ;;  %v2286_v6 = vld [vmem:[%s3312_s4] ss:$0 sm:$0xff] }
 0x2e3   : > { %v1186_v9 = vmul.f32 1.442695, %v1185_v7 }
 0x2e5   : > { %2585 = vpow2.f32 %v1186_v9 }
 0x2e8   : > { %v1295_v10 = vpop.xlane.xlu0 %1294 }
 0x2e9   : > { %v1296_v11 = vsub.f32 %v1287_v54, %v1295_v10 }
 0x2eb   : > { %v1297_v12 = vmul.f32 1.442695, %v1296_v11 }
 0x2ed   : > { %2587 = vpow2.f32 %v1297_v12 }
 0x2f0   : > { %v1405_v13 = vpop.xlane.xlu0 %1404 }
 0x2f1   : > { %v1406_v14 = vsub.f32 %v1397_v59, %v1405_v13 }
 0x2f2   : > { %v2586_v15 = vpop.eup %2585 }
 0x2f3   : > { %v1407_v16 = vmul.f32 1.442695, %v1406_v14  ;;  %v1188_v17 = vsel %vm1024_vm3, %v2586_v15, 0.0 }
 0x2f4   : > { %1189 = vadd.xlane.f32.xlu0 %v1188_v17 }
 0x2f5   : > { %2589 = vpow2.f32 %v1407_v16 }
 0x2fa   : > { %v2588_v18 = vpop.eup %2587 }
 0x2fb   : > { %v1299_v19 = vsel %vm1024_vm3, %v2588_v18, 0.0 }
 0x2fc   : > { %1300 = vadd.xlane.f32.xlu1 %v1299_v19 }
 0x302   : > { %v2590_v20 = vpop.eup %2589 }
 0x303   : > { %v1409_v21 = vsel %vm1024_vm3, %v2590_v20, 0.0 }
 0x304   : > { %1410 = vadd.xlane.f32.xlu0 %v1409_v21  ;;  %v2578_v21 = vld [vmem:[%s3313_s10] sm:$0xff]  }
 0x30b   : > { %v1079_v22 = vpop.xlane.xlu1 %1078 }
 0x30c   : > { %2591 = vrcp.f32 %v1079_v22  ;;  %v2580_v22 = vld [vmem:[%s2952_s8 + $0x10] sm:$0xff]  }
 0x30d   : > { %1415 = vrot.lane.b32.xlu1 %v1023_v45, %s2717_s22 }
 0x30f   : > { %v1196_v24 = vpop.permute.xlu1 %1195 }
 0x310   : > { %v1201_v27 = vsel %vm1086_vm4, %v1196_v24, 0 }
 0x319   : > { %v2592_v23 = vpop.eup %2591 }
 0x31a   : > { %1305 = vrot.lane.b32.xlu0 %v1023_v45, %s2715_s16  ;;  %v1081_v25 = vmul.f32 %v2592_v23, %v2584_v3 }
 0x31c   : > { %v1082_v26 = vpack.c.bf16 %v1081_v25, %v1081_v25 }
 0x31e   : > { %2419 = vmatmul.mubr.msk.bf16.vlgmr.msra.gmra.mxu0 %vm1024_vm3, %v1082_v26 }
 0x31f   : > { %2429 = vmatpush3.bf16.msra.mxu0 %v1201_v27  ;;  %2430 = vmatprep.mubr.msk.bf16.mxu0 %vm2714_vm1, %v2713_v4  ;;  %v2290_v27 = vld [vmem:[%s810_s15] ss:$0 sm:$0xff] }
 0x320   : > { %2440 = vmatprep.subr.bf16.mxu0 %v2713_v4 }
 0x37d   : > { %v1190_v28 = vpop.xlane.xlu0 %1189 }
 0x37e   : > { %2593 = vrcp.f32 %v1190_v28 }
 0x385   : > { %v1301_v29 = vpop.xlane.xlu1 %1300 }
 0x386   : > { %2595 = vrcp.f32 %v1301_v29  ;;  %v2291_v29 = vld [vmem:[%s813_s1] ss:$0 sm:$0xff] }
 0x389   : > { %v1416_v38 = vpop.permute.xlu1 %1415 }
 0x38a   : > { %v1421_v40 = vsel %vm1086_vm4, %v1416_v38, 0 }
 0x38b   : > { %v2594_v30 = vpop.eup %2593 }
 0x38c   : > { %v1192_v31 = vmul.f32 %v2594_v30, %v2586_v15 }
 0x38d   : > { %v1411_v32 = vpop.xlane.xlu0 %1410 }
 0x38e   : > { %2597 = vrcp.f32 %v1411_v32  ;;  %v1193_v33 = vpack.c.bf16 %v1192_v31, %v1192_v31 }
 0x390   : > { %2431 = vmatmul.mubr.msk.bf16.vlgmr.msra.gmra.mxu0 %vm1024_vm3, %v1193_v33  ;;  %v2581_v33 = vld [vmem:[%s2952_s8 + $0x8] sm:$0xff]  }
 0x391   : > { %v1306_v34 = vpop.permute.xlu0 %1305  ;;  %2442 = vmatprep.mubr.msk.bf16.mxu0 %vm2714_vm1, %v2713_v4 }
 0x392   : > { %v1311_v35 = vsel %vm1086_vm4, %v1306_v34, 0  ;;  %v2582_v34 = vld [vmem:[%s2952_s8] sm:$0xff]  }
 0x393   : > { %v2596_v36 = vpop.eup %2595  ;;  %2441 = vmatpush3.bf16.msra.mxu0 %v1311_v35  ;;  %v2292_v35 = vld [vmem:[%s3316_s14] ss:$0 sm:$0xff] }
 0x394   : > { %2452 = vmatprep.subr.bf16.mxu0 %v2713_v4  ;;  %v1303_v37 = vmul.f32 %v2596_v36, %v2588_v18 }
 0x396   : > { %v1304_v39 = vpack.c.bf16 %v1303_v37, %v1303_v37 }
 0x398   : > { %2443 = vmatmul.mubr.msk.bf16.vlgmr.msra.gmra.mxu0 %vm1024_vm3, %v1304_v39 }
 0x399   : > { %2453 = vmatpush3.bf16.msra.mxu0 %v1421_v40  ;;  %2454 = vmatprep.mubr.msk.bf16.mxu0 %vm2714_vm1, %v2713_v4 }
 0x39a   : > { %2466 = vmatprep.subr.bf16.mxu0 %v2713_v4 }
 0x39b   : > { %v2598_v41 = vpop.eup %2597 }
 0x39c   : > { %v1413_v42 = vmul.f32 %v2598_v41, %v2590_v20  ;;  %v2577_v20 = vld [vmem:[%s3313_s10 + $0x8] sm:$0xff]  }
 0x39e   : > { %v1414_v43 = vpack.c.bf16 %v1413_v42, %v1413_v42 }
 0x3a0   : > { %2455 = vmatmul.mubr.msk.bf16.vlgmr.msra.gmra.mxu0 %vm1024_vm3, %v1414_v43 }
 0x3a1   : > { %2470 = vmatprep.mubr.msk.bf16.mxu0 %vm2714_vm1, %v2713_v4  ;;  %2467 = vmatpush3.bf16.msra.mxu0 %v2577_v20 }
 0x3a2   : > { %2468 = vmatprep.subr.bf16.mxu0 %v2713_v4 }
 0x3a5   : > { %2469 = vmatpush3.bf16.msra.mxu0 %v2578_v21 }
 0x3de   : > { %v1124_v44 = vpop.f32.mrf.mxu0 }
 0x3e0   : > { %v2420_v45 = vpop.f32.mrf.mxu0 }
 0x3e2   : > { %v1127_v46 = vpop.f32.mrf.mxu0 }
 0x3e4   : > { %v2421_v47 = vpop.f32.mrf.mxu0 }
 0x450   : > { %v1237_v49 = vpop.f32.mrf.mxu0 }
 0x451   : > { %1464 = vrot.lane.b32.xlu1 %v1237_v49, %s2718_s25 }
 0x452   : > { %v2432_v50 = vpop.f32.mrf.mxu0 }
 0x454   : > { %v1240_v52 = vpop.f32.mrf.mxu0 }
 0x456   : > { %v2433_v53 = vpop.f32.mrf.mxu0 }
 0x458   : > { %v1347_v54 = vpop.f32.mrf.mxu0 }
 0x459   : > { %1468 = vrot.lane.b32.xlu0 %v1347_v54, %s2719_s20 }
 0x45a   : > { %v2444_v55 = vpop.f32.mrf.mxu0 }
 0x45c   : > { %v1350_v56 = vpop.f32.mrf.mxu0 }
 0x45e   : > { %v2445_v57 = vpop.f32.mrf.mxu0 }
 0x460   : > { %v1457_v58 = vpop.f32.mrf.mxu0 }
 0x461   : > { %1472 = vrot.lane.b32.xlu1 %v1457_v58, %s2720_s6 }
 0x462   : > { %v2456_v59 = vpop.f32.mrf.mxu0 }
 0x464   : > { %v1460_v60 = vpop.f32.mrf.mxu0 }
 0x466   : > { %v2457_v61 = vpop.f32.mrf.mxu0 }
 0x4c3   : > { %v1465_v62 = vpop.permute.xlu1 %1464 }
 0x4c4   : > { %v1475_v0 = vsel %vm1024_vm3, %v1124_v44, %v1465_v62 }
 0x4cb   : > { %v1469_v63 = vpop.permute.xlu0 %1468 }
 0x4cc   : > { %v1477_v1 = vsel %vm1476_vm5, %v1475_v0, %v1469_v63 }
 0x4d3   : > { %v1473_v2 = vpop.permute.xlu1 %1472 }
 0x4d4   : > { %v1479_v3 = vsel %vm1478_vm6, %v1477_v1, %v1473_v2 }
 0x4d5   : > { %v1480_v5 = vpack.c.bf16 %v1479_v3, %v1479_v3 }
 0x4d7   : > { %2463 = vmatmul.mubr.msk.bf16.vlgmr.msra.gmra.mxu1 %vm851_vm2, %v1480_v5 }
 0x4d8   : > { %2482 = vmatprep.mubr.msk.bf16.mxu1 %vm2714_vm1, %v2713_v4 }
 0x597   : > { %v1541_v7 = vpop.f32.mrf.mxu1 }
 0x598   : > { %v1542_v9 = vadd.f32 %v2286_v6, %v1541_v7 }
 0x599   : > { %v2464_v10 = vpop.f32.mrf.mxu1 }
 0x59a   : > { %v1547_v11 = vadd.f32 %v1542_v9, %v2978_v8  ;;  %v2579_v8 = vld [vmem:[%s2952_s8 + $0x18] sm:$0xff]   ;;  %s3317_s8 = sld [smem:[#allocation9_spill]] }
 0x59b   : > { %v1544_v12 = vpop.f32.mrf.mxu1  ;;  %2475 = vmatpush3.bf16.msra.mxu1 %v2579_v8 }
 0x59c   : > { %v1548_v13 = vsel %vm851_vm2, %v1547_v11, 0.0  ;;  %2476 = vmatprep.subr.bf16.mxu1 %v2713_v4 }
 0x59d   : > { %1549 = vadd.xlane.f32.xlu0 %v1548_v13  ;;  %v2465_v14 = vpop.f32.mrf.mxu1 }
 0x59f   : > { %2477 = vmatpush3.bf16.msra.mxu1 %v2580_v22 }
 0x5a0   : > { %2478 = vmatprep.subr.bf16.mxu1 %v2713_v4  ;;  %p2302_p1 = scmp.ne.s32.totalorder %s3317_s8, 1 }
 0x5a1   : > { %s3318_s26 = sld [smem:[#allocation30_spill]] (!%p2302_p1)  ;;  %s2722_s15 = smov (!%p2302_p1), 64  }
 0x5a2   : > { %s2723_s14 = smov (!%p2302_p1), 32   ;;  %s2724_s24 = smov (!%p2302_p1), 96  }
 0x5a3   : > { %2479 = vmatpush3.bf16.msra.mxu1 %v2581_v33 }
 0x5a4   : > { %2480 = vmatprep.subr.bf16.mxu1 %v2713_v4  ;;  %v2296_v4 = vld [vmem:[%s807_s18] ss:$0 sm:$0xff] }
 0x5a7   : > { %2481 = vmatpush3.bf16.msra.mxu1 %v2582_v34 }
 0x626   : > { %v1550_v15 = vpop.xlane.xlu0 %1549 }
 0x627   : > { %v1552_v16 = vmul.f32 0.03125, %v1550_v15 }
 0x629   : > { %v1553_v17 = vsub.f32 %v1547_v11, %v1552_v16 }
 0x62b   : > { %v1554_v18 = vmul.f32 %v1553_v17, %v1553_v17 }
 0x62d   : > { %v1555_v19 = vsel %vm851_vm2, %v1554_v18, 0.0 }
 0x62e   : > { %1556 = vadd.xlane.f32.xlu1 %v1555_v19 }
 0x6b7   : > { %v1557_v23 = vpop.xlane.xlu1 %1556 }
 0x6b8   : > { %v1558_v24 = vmul.f32 0.03125, %v1557_v23 }
 0x6ba   : > { %v1559_v25 = vadd.f32 1e-05, %v1558_v24 }
 0x6bc   : > { %2599 = vrsqrt.f32 %v1559_v25 }
 0x6c9   : > { %v2600_v26 = vpop.eup %2599 }
 0x6ca   : > { %v1561_v28 = vmul.f32 %v2600_v26, %v1553_v17 }
 0x6cc   : > { %v1568_v30 = vmul.f32 %v2290_v27, %v1561_v28 }
 0x6ce   : > { %v1575_v31 = vadd.f32 %v2291_v29, %v1568_v30 }
 0x6d0   : > { %v1576_v32 = vpack.c.bf16 %v1575_v31, %v1575_v31 }
 0x6d2   : > { %2471 = vmatmul.mubr.msk.bf16.vlgmr.msra.gmra.mxu0 %vm851_vm2, %v1576_v32 }
 0x792   : > { %v1637_v36 = vpop.f32.mrf.mxu0 }
 0x793   : > { %v1638_v37 = vadd.f32 %v2292_v35, %v1637_v36 }
 0x794   : > { %v2472_v38 = vpop.f32.mrf.mxu0 }
 0x795   : > { %v1643_v39 = vmax.f32 %v1638_v37, 0.0 }
 0x796   : > { %v1640_v40 = vpop.f32.mrf.mxu0 }
 0x797   : > { %v1644_v41 = vpack.c.bf16 %v1643_v39, %v1643_v39 }
 0x798   : > { %v2473_v42 = vpop.f32.mrf.mxu0 }
 0x799   : > { %2483 = vmatmul.mubr.msk.bf16.vlgmr.msra.gmra.mxu1 %vm1684_vm7, %v1644_v41 }
 0x859   : > { %v1722_v43 = vpop.f32.mrf.mxu1 }
 0x85a   : > { %v1723_v44 = vadd.f32 %v2296_v4, %v1722_v43 }
 0x85b   : > { %v2484_v45 = vpop.f32.mrf.mxu1 }
 0x85c   : > { %v1728_v46 = vadd.f32 %v1723_v44, %v1575_v31 }
 0x85d   : > { %v1725_v47 = vpop.f32.mrf.mxu1 }
 0x85e   : > { %v1729_v48 = vsel %vm851_vm2, %v1728_v46, 0.0 }
 0x85f   : > { %1730 = vadd.xlane.f32.xlu0 %v1729_v48  ;;  %v2485_v49 = vpop.f32.mrf.mxu1 }
 0x8e8   : > { %v1731_v50 = vpop.xlane.xlu0 %1730 }
 0x8e9   : > { %v1732_v51 = vmul.f32 0.03125, %v1731_v50 }
 0x8eb   : > { %v1733_v52 = vsub.f32 %v1728_v46, %v1732_v51 }
 0x8ed   : > { %v1734_v53 = vmul.f32 %v1733_v52, %v1733_v52 }
 0x8ef   : > { %v1735_v54 = vsel %vm851_vm2, %v1734_v53, 0.0 }
 0x8f0   : > { %1736 = vadd.xlane.f32.xlu0 %v1735_v54 }
 0x979   : > { %v1737_v55 = vpop.xlane.xlu0 %1736 }
 0x97a   : > { %v1738_v56 = vmul.f32 0.03125, %v1737_v55 }
 0x97c   : > { %v1739_v57 = vadd.f32 1e-05, %v1738_v56 }
 0x97e   : > { %2601 = vrsqrt.f32 %v1739_v57 }
 0x98b   : > { %v2602_v58 = vpop.eup %2601 }
 0x98c   : > { %v1741_v59 = vmul.f32 %v2602_v58, %v1733_v52 }
 0x98e   : > { %v1742_v60 = vmul.f32 %v2290_v27, %v1741_v59  ;;  %1748 = sbr.rel (%p2302_p1) target bundleno = 2800 (0xaf0), region = 100 }
 0x990   : > { %v1743_v61 = vadd.f32 %v2291_v29, %v1742_v60 }
 0x992   : > { %1744 = vst.msk [vmem:[#allocation2] sm:$0xff] %vm851_vm2, %v1743_v61 }
 0x993   : > { %v1749_v62 = vlaneseq  ;;  %v2721_v63 = vmov 1966171168   ;;  %v2603_v1 = vld [vmem:[%s3318_s26 + $0x78] sm:$0xff]   ;;  %v1800_v6 = vcombine.high %v1743_v61, %v1743_v61  ;;  %v2605_v7 = vld [vmem:[%s3318_s26 + $0x70] sm:$0xff]   ;;  %v2607_v11 = vld [vmem:[%s3318_s26 + $0x68] sm:$0xff]   ;;  %vm2022_vm2 = vcmask 32768  }
 0x994   : > { %v1756_v0 = vunpack.c.l.s4 %v2721_v63  ;;  %v2604_v3 = vld [vmem:[%s3318_s26 + $0x38] sm:$0xff]   ;;  %2364 = vmatprep.subr.bf16.mxu0 %v2603_v1  ;;  %v2606_v9 = vld [vmem:[%s3318_s26 + $0x30] sm:$0xff]   ;;  %v2608_v14 = vld [vmem:[%s3318_s26 + $0x28] sm:$0xff]  }
 0x995   : > { %v3126_v2 = vshrl.u32 %v1749_v62, 7  ;;  %2365 = vmatpush3.bf16.msra.mxu0 %v2604_v3  ;;  %vm1751_vm8 = vcmp.lt.s32.totalorder %v1749_v62, 32  ;;  %v2609_v19 = vld [vmem:[%s3318_s26 + $0x60] sm:$0xff]   ;;  %v2611_v24 = vld [vmem:[%s3318_s26 + $0x58] sm:$0xff]   ;;  %v2613_v28 = vld [vmem:[%s3318_s26 + $0x50] sm:$0xff]   ;;  %vm1780_vm9 = vcmp.ge.s32.totalorder %v1749_v62, 32 }
 0x996   : > { %v1757_v5 = vunpack.c.0.s8 %v1756_v0  ;;  %2366 = vmatprep.subr.bf16.mxu0 %v2605_v7  ;;  %1753 = vst.msk [vmem:[#allocation3] sm:$0x1] %vm1751_vm8, %v1743_v61  ;;  %v2610_v8 = vld [vmem:[%s3318_s26 + $0x20] sm:$0xff]   ;;  %v2612_v25 = vld [vmem:[%s3318_s26 + $0x18] sm:$0xff]   ;;  %v2614_v29 = vld [vmem:[%s3318_s26 + $0x10] sm:$0xff]   ;;  %vm1781_vm10 = vcmp.lt.s32.totalorder %v1749_v62, 64 }
 0x997   : > { %v2615_v30 = vld [vmem:[%s3318_s26 + $0x48] sm:$0xff]   ;;  %v2617_v32 = vld [vmem:[%s3318_s26 + $0x40] sm:$0xff]   ;;  %vm1788_vm11 = vcmp.ge.s32.totalorder %v1749_v62, 64  ;;  %vm1789_vm12 = vcmp.lt.s32.totalorder %v1749_v62, 96  ;;  %vm1782_vm13 = vmand %vm1780_vm9, %vm1781_vm10  ;;  %vm1796_vm15 = vcmp.ge.s32.totalorder %v1749_v62, 96  ;;  %vm1797_vm0 = vcmp.lt.s32.totalorder %v1749_v62, 128 }
 0x998   : > { %v1760_v10 = vsub.s32 %v1757_v5, %v3126_v2  ;;  %v2616_v31 = vld [vmem:[%s3318_s26 + $0x8] sm:$0xff]   ;;  %v2618_v33 = vld [vmem:[%s3318_s26] sm:$0xff]   ;;  %vm1790_vm14 = vmand %vm1788_vm11, %vm1789_vm12  ;;  %v1843_v40 = vsub.s32 0, %v3126_v2  ;;  %v1847_v41 = vsub.s32 1, %v3126_v2 }
 0x999   : > { %2367 = vmatpush3.bf16.msra.mxu0 %v2606_v9  ;;  %vm1798_vm1 = vmand %vm1796_vm15, %vm1797_vm0 }
 0x99a   : > { %v1761_v12 = vrot.slane %v1743_v61, %v1760_v10  ;;  %v1807_v13 = vrot.slane %v1800_v6, %v1760_v10  ;;  %2368 = vmatprep.subr.bf16.mxu0 %v2607_v11 }
 0x99c   : > { %v1769_v15 = vrot.slane %v1761_v12, %v1760_v10  ;;  %v1762_v16 = vcombine.high %v1761_v12, %v1761_v12  ;;  %v1814_v17 = vrot.slane %v1807_v13, %v1760_v10  ;;  %v1817_v18 = vcombine.high %v1807_v13, %v1807_v13 }
 0x99d   : > { %2369 = vmatpush3.bf16.msra.mxu0 %v2608_v14 }
 0x99e   : > { %v1784_v20 = vcombine.high %v1769_v15, %v1769_v15  ;;  %v1776_v21 = vrot.slane %v1762_v16, %v1760_v10  ;;  %1816 = vst.msk [vmem:[#allocation3 + $0x1] sm:$0x1] %vm1751_vm8, %v1814_v17  ;;  %v1829_v22 = vcombine.high %v1814_v17, %v1814_v17  ;;  %v1824_v23 = vrot.slane %v1817_v18, %v1760_v10 }
 0x99f   : > { %2370 = vmatprep.subr.bf16.mxu0 %v2609_v19 }
 0x9a0   : > { %1785 = vrot.lane.b32.xlu1 %v1784_v20, %s2722_s15  ;;  %1777 = vrot.lane.b32.xlu0 %v1776_v21, %s2723_s14  ;;  %v1792_v26 = vcombine.high %v1776_v21, %v1776_v21  ;;  %v1834_v27 = vcombine.high %v1824_v23, %v1824_v23 }
 0x9a1   : > { %2371 = vmatpush3.bf16.msra.mxu0 %v2610_v8 }
 0x9a2   : > { %2372 = vmatprep.subr.bf16.mxu0 %v2611_v24 }
 0x9a4   : > { %1830 = vrot.lane.b32.xlu1 %v1829_v22, %s2722_s15  ;;  %1825 = vrot.lane.b32.xlu0 %v1824_v23, %s2723_s14  ;;  %s3319_s15 = sld [smem:[#allocation31_spill]] }
 0x9a5   : > { %2373 = vmatpush3.bf16.msra.mxu0 %v2612_v25 }
 0x9a6   : > { %2374 = vmatprep.subr.bf16.mxu0 %v2613_v28 }
 0x9a8   : > { %1835 = vrot.lane.b32.xlu1 %v1834_v27, %s2724_s24  ;;  %1793 = vrot.lane.b32.xlu0 %v1792_v26, %s2724_s24 }
 0x9a9   : > { %2375 = vmatpush3.bf16.msra.mxu0 %v2614_v29 }
 0x9aa   : > { %2376 = vmatprep.subr.bf16.mxu0 %v2615_v30  ;;  %v1885_v47 = vld [vmem:[%s3319_s15] sm:$0x1] }
 0x9ad   : > { %2377 = vmatpush3.bf16.msra.mxu0 %v2616_v31 }
 0x9ae   : > { %2378 = vmatprep.subr.bf16.mxu0 %v2617_v32 }
 0x9b1   : > { %2379 = vmatpush3.bf16.msra.mxu0 %v2618_v33 }
 0xa12   : > { %v1786_v34 = vpop.permute.xlu1 %1785  ;;  %v1778_v35 = vpop.permute.xlu0 %1777 }
 0xa13   : > { %1783 = vst.msk [vmem:[#allocation3] sm:$0x1] %vm1782_vm13, %v1778_v35 }
 0xa14   : > { %1791 = vst.msk [vmem:[#allocation3] sm:$0x1] %vm1790_vm14, %v1786_v34 }
 0xa16   : > { %v1831_v36 = vpop.permute.xlu1 %1830  ;;  %v1826_v37 = vpop.permute.xlu0 %1825 }
 0xa17   : > { %1828 = vst.msk [vmem:[#allocation3 + $0x1] sm:$0x1] %vm1782_vm13, %v1826_v37 }
 0xa18   : > { %1833 = vst.msk [vmem:[#allocation3 + $0x1] sm:$0x1] %vm1790_vm14, %v1831_v36 }
 0xa1a   : > { %v1836_v38 = vpop.permute.xlu1 %1835  ;;  %v1794_v39 = vpop.permute.xlu0 %1793 }
 0xa1b   : > { %1838 = vst.msk [vmem:[#allocation3 + $0x1] sm:$0x1] %vm1798_vm1, %v1836_v38  ;;  %1799 = vst.msk [vmem:[#allocation3] sm:$0x1] %vm1798_vm1, %v1794_v39 }
 0xa22   : > { %v1839_v42 = vld [vmem:[#allocation3] sm:$0x3] }
 0xa23   : > { %v1844_v4 = vrot.slane %v1839_v42, %v1843_v40  ;;  %v1848_v43 = vrot.slane %v1839_v42, %v1847_v41 }
 0xa25   : > { %v1851_v44 = vpack.c.bf16 %v1844_v4, %v1844_v4  ;;  %v1852_v45 = vpack.c.bf16 %v1848_v43, %v1848_v43 }
 0xa27   : > { %2014 = vmatprep.mubr.bf16.mxu0 %v1852_v45 }
 0xa28   : > { %2015 = vmatmul.mubr.bf16.vlgmr.msra.gmra.mxu0 %v1851_v44 }
 0xae8   : > { %v2380_v46 = vpop.f32.mrf.mxu0 }
 0xaea   : > { %v2381_v48 = vpop.f32.mrf.mxu0 }
 0xaeb   : > { %v2382_v49 = vadd.f32 %v2381_v48, %v2380_v46 }
 0xaec   : > { %v2383_v50 = vpop.f32.mrf.mxu0 }
 0xaed   : > { %v2017_v51 = vadd.f32 %v2382_v49, %v1885_v47 }
 0xaee   : > { %v2384_v52 = vpop.f32.mrf.mxu0 }
 0xaef   : > { %2023 = vst.msk [vmem:[%s2964_s21] sm:$0x1] %vm2022_vm2, %v2017_v51 }
 0xaf0 PF: > { %s3320_s14 = sld [smem:[#allocation10_spill]]  ;;  %s2037_s20 = sshll.u32 %s2964_s21, 4  ;;  %s2038_s20 = int_to_ptr.vmem [resolvable:$true] %s2037_s20 }
 0xaf1   : > { %s3322_s18 = sld [smem:[#allocation32_spill]]  ;;  %s3323_s6 = sand.u32 1, %s2687_s28  }
 0xaf2   : > { %s2025_s24 = scalar_lea.sflag [#allocation5], %s3323_s6  ;;  %s2619_s17 = scalar_lea.vmem %s2038_s20, 16 }
 0xaf3   : > { %p2620_p2 = scmp.ne.s32.totalorder %s2038_s20, %s2619_s17  ;;  %s2725_s4 = smov [#allocation4]  }
 0xaf4   : > { %s2623_s10 = sshll.u32 %s2725_s4, 4  ;;  %s2624_s10 = int_to_ptr.vmem [resolvable:$false] %s2623_s10 }
 0xaf5   : > { %p2621_p4 = pnand %p2620_p2, %p2870_p3  ;;  %s2625_s2 = scalar_lea.vmem %s2624_s10, 32 }
 0xaf6   : > { %s2319_s23 = sshll.u32 %s3320_s14, 4  ;;  %p2626_p6 = scmp.lt.s32.totalorder %s2038_s20, %s2624_s10 }
 0xaf7   : > { %s2035_s25 = scalar_lea.hbm %s3322_s18, %s2319_s23  ;;  %p2622_p5 = pneg %p2621_p4 }
 0xaf8   : > { %p2627_p7 = scmp.lt.s32.totalorder %s2625_s2, %s2619_s17 }
 0xafa   : > { %p2628_p8 = por %p2627_p7, %p2626_p6 }
 0xafc   : > { %p2629_p10 = pnand %p2628_p8, %p2622_p5 }
 0xafe   : > { %2632 = shalt.err (!%p2629_p10)
}
 0xaff   : > { %s2633_s19 = scalar_lea.hbm %s2035_s25, 16  ;;  %s2637_s0 = scalar_lea.hbm %s3322_s18, 32 }
 0xb00   : > { %p2634_p11 = scmp.ne.s32.totalorder %s2035_s25, %s2633_s19  ;;  %p2638_p0 = scmp.lt.s32.totalorder %s2035_s25, %s3322_s18 }
 0xb01   : > { %p2639_p1 = scmp.lt.s32.totalorder %s2637_s0, %s2633_s19 }
 0xb02   : > { %p2635_p12 = pnand %p2634_p11, %p2870_p3 }
 0xb03   : > { %p2640_p2 = por %p2639_p1, %p2638_p0 }
 0xb04   : > { %p2636_p13 = pneg %p2635_p12 }
 0xb06   : > { %p2641_p4 = pnand %p2640_p2, %p2636_p13 }
 0xb08   : > { %2644 = shalt.err (!%p2641_p4)
}
 0xb09   : > { %2486 = dma.vmem_to_hbm [thread:$0]  (%p2870_p3), %s2038_s20, 16, %s2035_s25, %s2025_s24  }
 0xb0a PF: > { %s3324_s22 = sld [smem:[#allocation13_spill]] }
 0xb0b   : > { %s3325_s15 = sld [smem:[#allocation7_spill]] }
 0xb10   : > { %p2492_p5 = scmp.ge.s32.totalorder %s3324_s22, 2 }
 0xb11   : > { %s2049_s23 = sand.u32 1, %s3325_s15  }
 0xb12   : > { %p2489_p6 = pnand %p2492_p5, %p2880_p9  ;;  %s2050_s8 = scalar_lea.sflag [#allocation5], %s2049_s23 }
 0xb14   : > { %p2490_p7 = pneg %p2489_p6 }
 0xb16   : > { %2678 = dma.done.wait (%p2490_p7), %s2050_s8, 16  }
 0xb17   : > { %2680 = vsyncadd (%p2490_p7), %s2050_s8, 4294967280  ;;  %s31_s20 = sadd.s32 1, %s3324_s22   ;;  %s3327_s6 = sld [smem:[#allocation8_spill]] }
 0xb18   : > { %p28_p8 = scmp.ge.s32.totalorder %s31_s20, 6   ;;  %s3328_s29 = sld [smem:[#allocation18_spill]] }
 0xb19   : > { %s3329_s30 = sld [smem:[#allocation11_spill]]  ;;  %s3333_s27 = smov %s2687_s28 }
 0xb1a   : > { %s3330_s0 = sld [smem:[#allocation12_spill]]  ;;  %30 = sbr.rel (!%p28_p8) target bundleno = 18 (0x12), region = 177 }
 0xb1b   : > { %s3331_s19 = sld [smem:[#allocation14_spill]] }
 0xb1c   : > { %s3332_s1 = sld [smem:[#allocation16_spill]] }
 0xb1d   : > { %s3334_s28 = smov %s3327_s6 }
 0xb1f   :  { %2054 = vsyncpa [#allocation5], 1 }
 0xb20   :  { %2056 = vsyncpa [#allocation5 + $0x1], 1 }

</bundles_post_ra>
